<compile_context>
chip_gen: v5e
topology: v5e:2x2
jax: 0.10.0
libtpu: 0.0.40
codegen_flags: <defaults>
</compile_context>

<pallas_src>
import jax
import jax.numpy as jnp
from jax.experimental import pallas as pl
from jax.experimental.pallas import tpu as pltpu


_VMEM_LIMIT = 32 * 1024 * 1024  # explicit scoped-VMEM budget (safe on v5e/v6e/v7x)


def _largest_divisor_tile(n, target):
    """Largest tile size <= target that divides n (n is small in tests)."""
    t = min(target, n)
    while n % t:
        t -= 1
    return t


# ----------------------------------------------------------------------------
# Kernel 1 (fused): pairwise negative squared distances for k-NN  +  per-point
# projections p = h @ Wp (bf16) and q = h @ Wq + bias (f32).  Tiled over rows.
# ----------------------------------------------------------------------------
def _dist_project_kernel(hq_ref, ha_ref, wp_ref, wq_ref, bias_ref,
                         d_ref, p_ref, q_ref):
    hq = hq_ref[0]                                   # (TM, Cin) f32 query tile
    ha = ha_ref[0]                                   # (N,  Cin) f32 all points
    hq_bf = hq.astype(jnp.bfloat16)
    ha_bf = ha.astype(jnp.bfloat16)

    # --- k-NN metric: -||xi||^2 + 2 xi.xj - ||xj||^2  (matches PyTorch knn) ---
    # bf16 operands, f32 MXU accumulation; contract last dims (no x.T via XLU).
    inner = jax.lax.dot_general(
        hq_bf, ha_bf, (((1,), (1,)), ((), ())),
        preferred_element_type=jnp.float32)          # (TM, N)
    q_sq = jnp.sum(hq * hq, axis=-1, keepdims=True)  # (TM, 1) f32
    ones = jnp.ones((1, hq.shape[1]), jnp.float32)   # (1, Cin)
    a_sq = jax.lax.dot_general(                      # (1, N) row of ||xj||^2
        ones, ha * ha, (((1,), (1,)), ((), ())),
        preferred_element_type=jnp.float32)
    d_ref[0] = 2.0 * inner - q_sq - a_sq

    # --- per-point projections (1x1 conv split, BN folded into W / bias) ---
    wp = wp_ref[...].astype(jnp.bfloat16)            # (Cin, Cout)
    wq = wq_ref[...].astype(jnp.bfloat16)            # (Cin, Cout)
    p = jnp.dot(hq_bf, wp, preferred_element_type=jnp.float32)          # (TM, Cout)
    qv = jnp.dot(hq_bf, wq, preferred_element_type=jnp.float32) + bias_ref[...]
    p_ref[0] = p.astype(p_ref.dtype)                 # bf16 (gathered later)
    q_ref[0] = qv                                    # f32 (added after max)


def dist_project(h, wp, wq, bias, tile_m=256):
    """h: (B, N, Cin) f32 -> (dist (B,N,N) f32, p (B,N,Cout) bf16, q (B,N,Cout) f32)."""
    B, N, Cin = h.shape
    Cout = wp.shape[1]
    tm = _largest_divisor_tile(N, tile_m)
    return pl.pallas_call(
        _dist_project_kernel,
        out_shape=(jax.ShapeDtypeStruct((B, N, N), jnp.float32),
                   jax.ShapeDtypeStruct((B, N, Cout), jnp.bfloat16),
                   jax.ShapeDtypeStruct((B, N, Cout), jnp.float32)),
        grid=(B, N // tm),
        in_specs=[
            pl.BlockSpec((1, tm, Cin), lambda b, i: (b, i, 0)),   # query row tile
            pl.BlockSpec((1, N, Cin), lambda b, i: (b, 0, 0)),    # all points per b
            pl.BlockSpec((Cin, Cout), lambda b, i: (0, 0)),
            pl.BlockSpec((Cin, Cout), lambda b, i: (0, 0)),
            pl.BlockSpec((1, Cout), lambda b, i: (0, 0)),
        ],
        out_specs=(pl.BlockSpec((1, tm, N), lambda b, i: (b, i, 0)),
                   pl.BlockSpec((1, tm, Cout), lambda b, i: (b, i, 0)),
                   pl.BlockSpec((1, tm, Cout), lambda b, i: (b, i, 0))),
        compiler_params=pltpu.CompilerParams(
            dimension_semantics=("parallel", "parallel"),
            vmem_limit_bytes=_VMEM_LIMIT),
    )(h, h, wp, wq, bias)


# ----------------------------------------------------------------------------
# Kernel 2: fused neighbour combine:  LeakyReLU( max_k(p[idx]) + q )
# (gathered is neighbour-major -> the max is a leading-axis VPU reduction)
# ----------------------------------------------------------------------------
def _combine_kernel(g_ref, q_ref, out_ref):
    g = g_ref[0].astype(jnp.float32)     # (k, TM, Cout) gathered p rows
    m = jnp.max(g, axis=0)               # (TM, Cout): k-1 elementwise VPU maxes
    y = m + q_ref[0]                      # add centre term once per point (f32)
    out_ref[0] = jnp.where(y > 0, y, 0.2 * y)   # LeakyReLU(0.2), f32 (v5e-safe)


def edge_combine(gathered, q, tile_m=256):
    """gathered: (B, k, N, Cout) bf16, q: (B, N, Cout) f32 -> (B, N, Cout) f32."""
    B, k, N, Cout = gathered.shape
    tm = _largest_divisor_tile(N, tile_m)
    return pl.pallas_call(
        _combine_kernel,
        out_shape=jax.ShapeDtypeStruct((B, N, Cout), jnp.float32),
        grid=(B, N // tm),
        in_specs=[
            pl.BlockSpec((1, k, tm, Cout), lambda b, i: (b, 0, i, 0)),
            pl.BlockSpec((1, tm, Cout), lambda b, i: (b, i, 0)),
        ],
        out_specs=pl.BlockSpec((1, tm, Cout), lambda b, i: (b, i, 0)),
        compiler_params=pltpu.CompilerParams(
            dimension_semantics=("parallel", "parallel"),
            vmem_limit_bytes=_VMEM_LIMIT),
    )(gathered, q)


# ----------------------------------------------------------------------------
# Parameter construction (deterministic, synthetic), with the W_a/W_b split
# ----------------------------------------------------------------------------
def make_layer_params(key, c_in, c_out):
    kw, kg, kb, km, kv = jax.random.split(key, 5)
    w = 0.1 * jax.random.normal(kw, (c_out, 2 * c_in), jnp.float32)  # 1x1 Conv2d, no bias
    gamma = 1.0 + 0.1 * jax.random.normal(kg, (c_out,), jnp.float32)
    beta = 0.1 * jax.random.normal(kb, (c_out,), jnp.float32)
    running_mean = 0.05 * jax.random.normal(km, (c_out,), jnp.float32)
    running_var = 1.0 + 0.1 * jax.random.uniform(kv, (c_out,), jnp.float32)
    eps = 1e-5
    scale = gamma / jnp.sqrt(running_var + eps)      # (Cout,) eval-mode BN fold
    shift = beta - running_mean * scale              # (Cout,)
    w_a = w[:, :c_in].T                              # (Cin, Cout) acts on (feat - centre)
    w_b = w[:, c_in:].T                              # (Cin, Cout) acts on centre
    wp = w_a * scale[None, :]                        # neighbour projection (BN scale folded)
    wq = (w_b - w_a) * scale[None, :]                # centre projection (BN scale folded)
    bias = shift[None, :]                            # (1, Cout) BN shift -> q bias
    return wp, wq, bias


def build_params(key, input_dim=3):
    keys = jax.random.split(key, 4)
    return [
        make_layer_params(keys[0], input_dim, 64),
        make_layer_params(keys[1], 64, 64),
        make_layer_params(keys[2], 64, 128),
        make_layer_params(keys[3], 128, 256),
    ]


# ----------------------------------------------------------------------------
# Full forward (equivalent to DGCNNFeatureSpace.forward)
# ----------------------------------------------------------------------------
def dgcnn_feature_space(x, params, k):
    """x: (B, N, input_dim) -> (B, N, 256)   (== PyTorch x4.transpose(1, 2))."""
    h = x.astype(jnp.float32)
    for (wp, wq, bias) in params:
        dist, p, q = dist_project(h, wp, wq, bias)   # fused distance + projections
        # TODO(synk): top-k selection and the data-dependent neighbour-row gather
        # have no clean Pallas equivalent here; they stay in XLA glue.
        _, idx = jax.lax.top_k(dist, k)              # (B, N, k) nearest (incl. self)
        idx_t = jnp.swapaxes(idx, 1, 2)              # (B, k, N): neighbour-major gather
        gathered = jax.vmap(lambda pm, im: jnp.take(pm, im, axis=0))(p, idx_t)  # (B,k,N,Cout)
        h = edge_combine(gathered, q)                # (B, N, Cout) f32
    return h


if __name__ == "__main__":
    B, N, INPUT_DIM, K = 2, 16, 3, 8

    key = jax.random.PRNGKey(0)
    key_x, key_p = jax.random.split(key)
    x = jax.random.normal(key_x, (B, N, INPUT_DIM), jnp.float32)
    params = build_params(key_p, input_dim=INPUT_DIM)

    fwd = jax.jit(dgcnn_feature_space, static_argnums=2)
    out = jax.block_until_ready(fwd(x, params, K))
    assert out.shape == (B, N, 256), out.shape
    print("KERNEL_OK")
</pallas_src>

<mosaic_0001>
module attributes {stable_mosaic.version = 11 : i64} {
  func.func @_dist_project_kernel(%arg0: i32, %arg1: i32, %arg2: memref<1x16x3xf32, #tpu.memory_space<vmem>>, %arg3: memref<1x16x3xf32, #tpu.memory_space<vmem>>, %arg4: memref<3x64xf32, #tpu.memory_space<vmem>>, %arg5: memref<3x64xf32, #tpu.memory_space<vmem>>, %arg6: memref<1x64xf32, #tpu.memory_space<vmem>>, %arg7: memref<1x16x16xf32, #tpu.memory_space<vmem>>, %arg8: memref<1x16x64xbf16, #tpu.memory_space<vmem>>, %arg9: memref<1x16x64xf32, #tpu.memory_space<vmem>>) attributes {dimension_semantics = [#tpu.dimension_semantics<parallel>, #tpu.dimension_semantics<parallel>], iteration_bounds = array<i64: 2, 1>, scalar_prefetch = 0 : i64, scratch_operands = 0 : i64, tpu.core_type = #tpu.core_type<tc>, window_params = [{transform_indices = @transform_0, window_bounds = array<i64: 1, 16, 3>}, {transform_indices = @transform_1, window_bounds = array<i64: 1, 16, 3>}, {pipeline_mode = #tpu.pipeline_mode<synchronous>, transform_indices = @transform_2, window_bounds = array<i64: 3, 64>}, {pipeline_mode = #tpu.pipeline_mode<synchronous>, transform_indices = @transform_3, window_bounds = array<i64: 3, 64>}, {pipeline_mode = #tpu.pipeline_mode<synchronous>, transform_indices = @transform_4, window_bounds = array<i64: 1, 64>}, {transform_indices = @transform_5, window_bounds = array<i64: 1, 16, 16>}, {transform_indices = @transform_6, window_bounds = array<i64: 1, 16, 64>}, {transform_indices = @transform_7, window_bounds = array<i64: 1, 16, 64>}]} {
    %c0 = arith.constant 0 : index
    %c0_0 = arith.constant 0 : index
    %c0_1 = arith.constant 0 : index
    %0 = vector.load %arg2[%c0, %c0_0, %c0_1] : memref<1x16x3xf32, #tpu.memory_space<vmem>>, vector<1x16x3xf32>
    %1 = vector.shape_cast %0 : vector<1x16x3xf32> to vector<16x3xf32>
    %c0_2 = arith.constant 0 : index
    %c0_3 = arith.constant 0 : index
    %c0_4 = arith.constant 0 : index
    %2 = vector.load %arg3[%c0_2, %c0_3, %c0_4] : memref<1x16x3xf32, #tpu.memory_space<vmem>>, vector<1x16x3xf32>
    %3 = vector.shape_cast %2 : vector<1x16x3xf32> to vector<16x3xf32>
    %4 = arith.truncf %1 : vector<16x3xf32> to vector<16x3xbf16>
    %5 = arith.truncf %3 : vector<16x3xf32> to vector<16x3xbf16>
    %cst = arith.constant dense<0.000000e+00> : vector<16x16xf32>
    %6 = tpu.matmul %4, %5, %cst {dimension_numbers = #tpu.dot_dimension_numbers<[1], [1], [0], [0], [0, 0, 1, 0], [], []>} : vector<16x3xbf16>, vector<16x3xbf16>, vector<16x16xf32> -> vector<16x16xf32>
    %7 = arith.mulf %1, %1 : vector<16x3xf32>
    %cst_5 = arith.constant dense<0.000000e+00> : vector<16xf32>
    %8 = vector.multi_reduction <add>, %7, %cst_5 [1] : vector<16x3xf32> to vector<16xf32>
    %9 = vector.shape_cast %8 : vector<16xf32> to vector<16x1xf32>
    %cst_6 = arith.constant 1.000000e+00 : f32
    %10 = vector.broadcast %cst_6 : f32 to vector<1x3xf32>
    %11 = arith.mulf %3, %3 : vector<16x3xf32>
    %cst_7 = arith.constant dense<0.000000e+00> : vector<1x16xf32>
    %12 = tpu.matmul %10, %11, %cst_7 {dimension_numbers = #tpu.dot_dimension_numbers<[1], [1], [0], [0], [0, 0, 1, 0], [], []>} : vector<1x3xf32>, vector<16x3xf32>, vector<1x16xf32> -> vector<1x16xf32>
    %cst_8 = arith.constant 2.000000e+00 : f32
    %13 = vector.broadcast %cst_8 : f32 to vector<16x16xf32>
    %14 = arith.mulf %13, %6 : vector<16x16xf32>
    %15 = vector.broadcast %9 : vector<16x1xf32> to vector<16x16xf32>
    %16 = arith.subf %14, %15 : vector<16x16xf32>
    %17 = vector.broadcast %12 : vector<1x16xf32> to vector<16x16xf32>
    %18 = arith.subf %16, %17 : vector<16x16xf32>
    %c0_9 = arith.constant 0 : index
    %c0_10 = arith.constant 0 : index
    %c0_11 = arith.constant 0 : index
    %19 = vector.load %arg7[%c0_9, %c0_10, %c0_11] : memref<1x16x16xf32, #tpu.memory_space<vmem>>, vector<1x16x16xf32>
    %20 = vector.shape_cast %19 : vector<1x16x16xf32> to vector<16x16xf32>
    %21 = vector.shape_cast %18 : vector<16x16xf32> to vector<1x16x16xf32>
    tpu.vector_store %arg7[%c0_9, %c0_10, %c0_11], %21 {strides = array<i32>} : memref<1x16x16xf32, #tpu.memory_space<vmem>>, vector<1x16x16xf32>,
    %c0_12 = arith.constant 0 : index
    %c0_13 = arith.constant 0 : index
    %22 = vector.load %arg4[%c0_12, %c0_13] : memref<3x64xf32, #tpu.memory_space<vmem>>, vector<3x64xf32>
    %23 = arith.truncf %22 : vector<3x64xf32> to vector<3x64xbf16>
    %c0_14 = arith.constant 0 : index
    %c0_15 = arith.constant 0 : index
    %24 = vector.load %arg5[%c0_14, %c0_15] : memref<3x64xf32, #tpu.memory_space<vmem>>, vector<3x64xf32>
    %25 = arith.truncf %24 : vector<3x64xf32> to vector<3x64xbf16>
    %cst_16 = arith.constant dense<0.000000e+00> : vector<16x64xf32>
    %26 = tpu.matmul %4, %23, %cst_16 {dimension_numbers = #tpu.dot_dimension_numbers<[1], [0], [0], [1], [0, 0, 1, 1], [], []>} : vector<16x3xbf16>, vector<3x64xbf16>, vector<16x64xf32> -> vector<16x64xf32>
    %cst_17 = arith.constant dense<0.000000e+00> : vector<16x64xf32>
    %27 = tpu.matmul %4, %25, %cst_17 {dimension_numbers = #tpu.dot_dimension_numbers<[1], [0], [0], [1], [0, 0, 1, 1], [], []>} : vector<16x3xbf16>, vector<3x64xbf16>, vector<16x64xf32> -> vector<16x64xf32>
    %c0_18 = arith.constant 0 : index
    %c0_19 = arith.constant 0 : index
    %28 = vector.load %arg6[%c0_18, %c0_19] : memref<1x64xf32, #tpu.memory_space<vmem>>, vector<1x64xf32>
    %29 = vector.broadcast %28 : vector<1x64xf32> to vector<16x64xf32>
    %30 = arith.addf %27, %29 : vector<16x64xf32>
    %31 = arith.truncf %26 : vector<16x64xf32> to vector<16x64xbf16>
    %c0_20 = arith.constant 0 : index
    %c0_21 = arith.constant 0 : index
    %c0_22 = arith.constant 0 : index
    %32 = vector.load %arg8[%c0_20, %c0_21, %c0_22] : memref<1x16x64xbf16, #tpu.memory_space<vmem>>, vector<1x16x64xbf16>
    %33 = vector.shape_cast %32 : vector<1x16x64xbf16> to vector<16x64xbf16>
    %34 = vector.shape_cast %31 : vector<16x64xbf16> to vector<1x16x64xbf16>
    tpu.vector_store %arg8[%c0_20, %c0_21, %c0_22], %34 {strides = array<i32>} : memref<1x16x64xbf16, #tpu.memory_space<vmem>>, vector<1x16x64xbf16>,
    %c0_23 = arith.constant 0 : index
    %c0_24 = arith.constant 0 : index
    %c0_25 = arith.constant 0 : index
    %35 = vector.load %arg9[%c0_23, %c0_24, %c0_25] : memref<1x16x64xf32, #tpu.memory_space<vmem>>, vector<1x16x64xf32>
    %36 = vector.shape_cast %35 : vector<1x16x64xf32> to vector<16x64xf32>
    %37 = vector.shape_cast %30 : vector<16x64xf32> to vector<1x16x64xf32>
    tpu.vector_store %arg9[%c0_23, %c0_24, %c0_25], %37 {strides = array<i32>} : memref<1x16x64xf32, #tpu.memory_space<vmem>>, vector<1x16x64xf32>,
    return
  }
  func.func @transform_0(%arg0: i32, %arg1: i32) -> (i32, i32, i32) {
    %c0_i32 = arith.constant 0 : i32
    %c0_i32_0 = arith.constant 0 : i32
    return %arg0, %arg1, %c0_i32 : i32, i32, i32
  }
  func.func @transform_1(%arg0: i32, %arg1: i32) -> (i32, i32, i32) {
    %c0_i32 = arith.constant 0 : i32
    %c0_i32_0 = arith.constant 0 : i32
    %c0_i32_1 = arith.constant 0 : i32
    return %arg0, %c0_i32, %c0_i32_0 : i32, i32, i32
  }
  func.func @transform_2(%arg0: i32, %arg1: i32) -> (i32, i32) {
    %c0_i32 = arith.constant 0 : i32
    %c0_i32_0 = arith.constant 0 : i32
    %c0_i32_1 = arith.constant 0 : i32
    return %c0_i32, %c0_i32_0 : i32, i32
  }
  func.func @transform_3(%arg0: i32, %arg1: i32) -> (i32, i32) {
    %c0_i32 = arith.constant 0 : i32
    %c0_i32_0 = arith.constant 0 : i32
    %c0_i32_1 = arith.constant 0 : i32
    return %c0_i32, %c0_i32_0 : i32, i32
  }
  func.func @transform_4(%arg0: i32, %arg1: i32) -> (i32, i32) {
    %c0_i32 = arith.constant 0 : i32
    %c0_i32_0 = arith.constant 0 : i32
    %c0_i32_1 = arith.constant 0 : i32
    return %c0_i32, %c0_i32_0 : i32, i32
  }
  func.func @transform_5(%arg0: i32, %arg1: i32) -> (i32, i32, i32) {
    %c0_i32 = arith.constant 0 : i32
    %c0_i32_0 = arith.constant 0 : i32
    return %arg0, %arg1, %c0_i32 : i32, i32, i32
  }
  func.func @transform_6(%arg0: i32, %arg1: i32) -> (i32, i32, i32) {
    %c0_i32 = arith.constant 0 : i32
    %c0_i32_0 = arith.constant 0 : i32
    return %arg0, %arg1, %c0_i32 : i32, i32, i32
  }
  func.func @transform_7(%arg0: i32, %arg1: i32) -> (i32, i32, i32) {
    %c0_i32 = arith.constant 0 : i32
    %c0_i32_0 = arith.constant 0 : i32
    return %arg0, %arg1, %c0_i32 : i32, i32, i32
  }
}

module attributes {stable_mosaic.version = 11 : i64} {
  func.func @_combine_kernel(%arg0: i32, %arg1: i32, %arg2: memref<1x8x16x64xbf16, #tpu.memory_space<vmem>>, %arg3: memref<1x16x64xf32, #tpu.memory_space<vmem>>, %arg4: memref<1x16x64xf32, #tpu.memory_space<vmem>>) attributes {dimension_semantics = [#tpu.dimension_semantics<parallel>, #tpu.dimension_semantics<parallel>], iteration_bounds = array<i64: 2, 1>, scalar_prefetch = 0 : i64, scratch_operands = 0 : i64, tpu.core_type = #tpu.core_type<tc>, window_params = [{transform_indices = @transform_0, window_bounds = array<i64: 1, 8, 16, 64>}, {transform_indices = @transform_1, window_bounds = array<i64: 1, 16, 64>}, {transform_indices = @transform_2, window_bounds = array<i64: 1, 16, 64>}]} {
    %c0 = arith.constant 0 : index
    %c0_0 = arith.constant 0 : index
    %c0_1 = arith.constant 0 : index
    %c0_2 = arith.constant 0 : index
    %0 = vector.load %arg2[%c0, %c0_0, %c0_1, %c0_2] : memref<1x8x16x64xbf16, #tpu.memory_space<vmem>>, vector<1x8x16x64xbf16>
    %1 = vector.shape_cast %0 : vector<1x8x16x64xbf16> to vector<8x16x64xbf16>
    %2 = arith.extf %1 : vector<8x16x64xbf16> to vector<8x16x64xf32>
    %cst = arith.constant dense<0xFF800000> : vector<16x64xf32>
    %3 = vector.multi_reduction <maximumf>, %2, %cst [0] : vector<8x16x64xf32> to vector<16x64xf32>
    %c0_3 = arith.constant 0 : index
    %c0_4 = arith.constant 0 : index
    %c0_5 = arith.constant 0 : index
    %4 = vector.load %arg3[%c0_3, %c0_4, %c0_5] : memref<1x16x64xf32, #tpu.memory_space<vmem>>, vector<1x16x64xf32>
    %5 = vector.shape_cast %4 : vector<1x16x64xf32> to vector<16x64xf32>
    %6 = arith.addf %3, %5 : vector<16x64xf32>
    %cst_6 = arith.constant 0.000000e+00 : f32
    %7 = vector.broadcast %cst_6 : f32 to vector<16x64xf32>
    %8 = arith.cmpf ogt, %6, %7 : vector<16x64xf32>
    %cst_7 = arith.constant 2.000000e-01 : f32
    %9 = vector.broadcast %cst_7 : f32 to vector<16x64xf32>
    %10 = arith.mulf %9, %6 : vector<16x64xf32>
    %11 = arith.select %8, %6, %10 : vector<16x64xi1>, vector<16x64xf32>
    %c0_8 = arith.constant 0 : index
    %c0_9 = arith.constant 0 : index
    %c0_10 = arith.constant 0 : index
    %12 = vector.load %arg4[%c0_8, %c0_9, %c0_10] : memref<1x16x64xf32, #tpu.memory_space<vmem>>, vector<1x16x64xf32>
    %13 = vector.shape_cast %12 : vector<1x16x64xf32> to vector<16x64xf32>
    %14 = vector.shape_cast %11 : vector<16x64xf32> to vector<1x16x64xf32>
    tpu.vector_store %arg4[%c0_8, %c0_9, %c0_10], %14 {strides = array<i32>} : memref<1x16x64xf32, #tpu.memory_space<vmem>>, vector<1x16x64xf32>,
    return
  }
  func.func @transform_0(%arg0: i32, %arg1: i32) -> (i32, i32, i32, i32) {
    %c0_i32 = arith.constant 0 : i32
    %c0_i32_0 = arith.constant 0 : i32
    %c0_i32_1 = arith.constant 0 : i32
    return %arg0, %c0_i32, %arg1, %c0_i32_0 : i32, i32, i32, i32
  }
  func.func @transform_1(%arg0: i32, %arg1: i32) -> (i32, i32, i32) {
    %c0_i32 = arith.constant 0 : i32
    %c0_i32_0 = arith.constant 0 : i32
    return %arg0, %arg1, %c0_i32 : i32, i32, i32
  }
  func.func @transform_2(%arg0: i32, %arg1: i32) -> (i32, i32, i32) {
    %c0_i32 = arith.constant 0 : i32
    %c0_i32_0 = arith.constant 0 : i32
    return %arg0, %arg1, %c0_i32 : i32, i32, i32
  }
}

module attributes {stable_mosaic.version = 11 : i64} {
  func.func @_dist_project_kernel(%arg0: i32, %arg1: i32, %arg2: memref<1x16x64xf32, #tpu.memory_space<vmem>>, %arg3: memref<1x16x64xf32, #tpu.memory_space<vmem>>, %arg4: memref<64x64xf32, #tpu.memory_space<vmem>>, %arg5: memref<64x64xf32, #tpu.memory_space<vmem>>, %arg6: memref<1x64xf32, #tpu.memory_space<vmem>>, %arg7: memref<1x16x16xf32, #tpu.memory_space<vmem>>, %arg8: memref<1x16x64xbf16, #tpu.memory_space<vmem>>, %arg9: memref<1x16x64xf32, #tpu.memory_space<vmem>>) attributes {dimension_semantics = [#tpu.dimension_semantics<parallel>, #tpu.dimension_semantics<parallel>], iteration_bounds = array<i64: 2, 1>, scalar_prefetch = 0 : i64, scratch_operands = 0 : i64, tpu.core_type = #tpu.core_type<tc>, window_params = [{transform_indices = @transform_0, window_bounds = array<i64: 1, 16, 64>}, {transform_indices = @transform_1, window_bounds = array<i64: 1, 16, 64>}, {pipeline_mode = #tpu.pipeline_mode<synchronous>, transform_indices = @transform_2, window_bounds = array<i64: 64, 64>}, {pipeline_mode = #tpu.pipeline_mode<synchronous>, transform_indices = @transform_3, window_bounds = array<i64: 64, 64>}, {pipeline_mode = #tpu.pipeline_mode<synchronous>, transform_indices = @transform_4, window_bounds = array<i64: 1, 64>}, {transform_indices = @transform_5, window_bounds = array<i64: 1, 16, 16>}, {transform_indices = @transform_6, window_bounds = array<i64: 1, 16, 64>}, {transform_indices = @transform_7, window_bounds = array<i64: 1, 16, 64>}]} {
    %c0 = arith.constant 0 : index
    %c0_0 = arith.constant 0 : index
    %c0_1 = arith.constant 0 : index
    %0 = vector.load %arg2[%c0, %c0_0, %c0_1] : memref<1x16x64xf32, #tpu.memory_space<vmem>>, vector<1x16x64xf32>
    %1 = vector.shape_cast %0 : vector<1x16x64xf32> to vector<16x64xf32>
    %c0_2 = arith.constant 0 : index
    %c0_3 = arith.constant 0 : index
    %c0_4 = arith.constant 0 : index
    %2 = vector.load %arg3[%c0_2, %c0_3, %c0_4] : memref<1x16x64xf32, #tpu.memory_space<vmem>>, vector<1x16x64xf32>
    %3 = vector.shape_cast %2 : vector<1x16x64xf32> to vector<16x64xf32>
    %4 = arith.truncf %1 : vector<16x64xf32> to vector<16x64xbf16>
    %5 = arith.truncf %3 : vector<16x64xf32> to vector<16x64xbf16>
    %cst = arith.constant dense<0.000000e+00> : vector<16x16xf32>
    %6 = tpu.matmul %4, %5, %cst {dimension_numbers = #tpu.dot_dimension_numbers<[1], [1], [0], [0], [0, 0, 1, 0], [], []>} : vector<16x64xbf16>, vector<16x64xbf16>, vector<16x16xf32> -> vector<16x16xf32>
    %7 = arith.mulf %1, %1 : vector<16x64xf32>
    %cst_5 = arith.constant dense<0.000000e+00> : vector<16xf32>
    %8 = vector.multi_reduction <add>, %7, %cst_5 [1] : vector<16x64xf32> to vector<16xf32>
    %9 = vector.shape_cast %8 : vector<16xf32> to vector<16x1xf32>
    %cst_6 = arith.constant 1.000000e+00 : f32
    %10 = vector.broadcast %cst_6 : f32 to vector<1x64xf32>
    %11 = arith.mulf %3, %3 : vector<16x64xf32>
    %cst_7 = arith.constant dense<0.000000e+00> : vector<1x16xf32>
    %12 = tpu.matmul %10, %11, %cst_7 {dimension_numbers = #tpu.dot_dimension_numbers<[1], [1], [0], [0], [0, 0, 1, 0], [], []>} : vector<1x64xf32>, vector<16x64xf32>, vector<1x16xf32> -> vector<1x16xf32>
    %cst_8 = arith.constant 2.000000e+00 : f32
    %13 = vector.broadcast %cst_8 : f32 to vector<16x16xf32>
    %14 = arith.mulf %13, %6 : vector<16x16xf32>
    %15 = vector.broadcast %9 : vector<16x1xf32> to vector<16x16xf32>
    %16 = arith.subf %14, %15 : vector<16x16xf32>
    %17 = vector.broadcast %12 : vector<1x16xf32> to vector<16x16xf32>
    %18 = arith.subf %16, %17 : vector<16x16xf32>
    %c0_9 = arith.constant 0 : index
    %c0_10 = arith.constant 0 : index
    %c0_11 = arith.constant 0 : index
    %19 = vector.load %arg7[%c0_9, %c0_10, %c0_11] : memref<1x16x16xf32, #tpu.memory_space<vmem>>, vector<1x16x16xf32>
    %20 = vector.shape_cast %19 : vector<1x16x16xf32> to vector<16x16xf32>
    %21 = vector.shape_cast %18 : vector<16x16xf32> to vector<1x16x16xf32>
    tpu.vector_store %arg7[%c0_9, %c0_10, %c0_11], %21 {strides = array<i32>} : memref<1x16x16xf32, #tpu.memory_space<vmem>>, vector<1x16x16xf32>,
    %c0_12 = arith.constant 0 : index
    %c0_13 = arith.constant 0 : index
    %22 = vector.load %arg4[%c0_12, %c0_13] : memref<64x64xf32, #tpu.memory_space<vmem>>, vector<64x64xf32>
    %23 = arith.truncf %22 : vector<64x64xf32> to vector<64x64xbf16>
    %c0_14 = arith.constant 0 : index
    %c0_15 = arith.constant 0 : index
    %24 = vector.load %arg5[%c0_14, %c0_15] : memref<64x64xf32, #tpu.memory_space<vmem>>, vector<64x64xf32>
    %25 = arith.truncf %24 : vector<64x64xf32> to vector<64x64xbf16>
    %cst_16 = arith.constant dense<0.000000e+00> : vector<16x64xf32>
    %26 = tpu.matmul %4, %23, %cst_16 {dimension_numbers = #tpu.dot_dimension_numbers<[1], [0], [0], [1], [0, 0, 1, 1], [], []>} : vector<16x64xbf16>, vector<64x64xbf16>, vector<16x64xf32> -> vector<16x64xf32>
    %cst_17 = arith.constant dense<0.000000e+00> : vector<16x64xf32>
    %27 = tpu.matmul %4, %25, %cst_17 {dimension_numbers = #tpu.dot_dimension_numbers<[1], [0], [0], [1], [0, 0, 1, 1], [], []>} : vector<16x64xbf16>, vector<64x64xbf16>, vector<16x64xf32> -> vector<16x64xf32>
    %c0_18 = arith.constant 0 : index
    %c0_19 = arith.constant 0 : index
    %28 = vector.load %arg6[%c0_18, %c0_19] : memref<1x64xf32, #tpu.memory_space<vmem>>, vector<1x64xf32>
    %29 = vector.broadcast %28 : vector<1x64xf32> to vector<16x64xf32>
    %30 = arith.addf %27, %29 : vector<16x64xf32>
    %31 = arith.truncf %26 : vector<16x64xf32> to vector<16x64xbf16>
    %c0_20 = arith.constant 0 : index
    %c0_21 = arith.constant 0 : index
    %c0_22 = arith.constant 0 : index
    %32 = vector.load %arg8[%c0_20, %c0_21, %c0_22] : memref<1x16x64xbf16, #tpu.memory_space<vmem>>, vector<1x16x64xbf16>
    %33 = vector.shape_cast %32 : vector<1x16x64xbf16> to vector<16x64xbf16>
    %34 = vector.shape_cast %31 : vector<16x64xbf16> to vector<1x16x64xbf16>
    tpu.vector_store %arg8[%c0_20, %c0_21, %c0_22], %34 {strides = array<i32>} : memref<1x16x64xbf16, #tpu.memory_space<vmem>>, vector<1x16x64xbf16>,
    %c0_23 = arith.constant 0 : index
    %c0_24 = arith.constant 0 : index
    %c0_25 = arith.constant 0 : index
    %35 = vector.load %arg9[%c0_23, %c0_24, %c0_25] : memref<1x16x64xf32, #tpu.memory_space<vmem>>, vector<1x16x64xf32>
    %36 = vector.shape_cast %35 : vector<1x16x64xf32> to vector<16x64xf32>
    %37 = vector.shape_cast %30 : vector<16x64xf32> to vector<1x16x64xf32>
    tpu.vector_store %arg9[%c0_23, %c0_24, %c0_25], %37 {strides = array<i32>} : memref<1x16x64xf32, #tpu.memory_space<vmem>>, vector<1x16x64xf32>,
    return
  }
  func.func @transform_0(%arg0: i32, %arg1: i32) -> (i32, i32, i32) {
    %c0_i32 = arith.constant 0 : i32
    %c0_i32_0 = arith.constant 0 : i32
    return %arg0, %arg1, %c0_i32 : i32, i32, i32
  }
  func.func @transform_1(%arg0: i32, %arg1: i32) -> (i32, i32, i32) {
    %c0_i32 = arith.constant 0 : i32
    %c0_i32_0 = arith.constant 0 : i32
    %c0_i32_1 = arith.constant 0 : i32
    return %arg0, %c0_i32, %c0_i32_0 : i32, i32, i32
  }
  func.func @transform_2(%arg0: i32, %arg1: i32) -> (i32, i32) {
    %c0_i32 = arith.constant 0 : i32
    %c0_i32_0 = arith.constant 0 : i32
    %c0_i32_1 = arith.constant 0 : i32
    return %c0_i32, %c0_i32_0 : i32, i32
  }
  func.func @transform_3(%arg0: i32, %arg1: i32) -> (i32, i32) {
    %c0_i32 = arith.constant 0 : i32
    %c0_i32_0 = arith.constant 0 : i32
    %c0_i32_1 = arith.constant 0 : i32
    return %c0_i32, %c0_i32_0 : i32, i32
  }
  func.func @transform_4(%arg0: i32, %arg1: i32) -> (i32, i32) {
    %c0_i32 = arith.constant 0 : i32
    %c0_i32_0 = arith.constant 0 : i32
    %c0_i32_1 = arith.constant 0 : i32
    return %c0_i32, %c0_i32_0 : i32, i32
  }
  func.func @transform_5(%arg0: i32, %arg1: i32) -> (i32, i32, i32) {
    %c0_i32 = arith.constant 0 : i32
    %c0_i32_0 = arith.constant 0 : i32
    return %arg0, %arg1, %c0_i32 : i32, i32, i32
  }
  func.func @transform_6(%arg0: i32, %arg1: i32) -> (i32, i32, i32) {
    %c0_i32 = arith.constant 0 : i32
    %c0_i32_0 = arith.constant 0 : i32
    return %arg0, %arg1, %c0_i32 : i32, i32, i32
  }
  func.func @transform_7(%arg0: i32, %arg1: i32) -> (i32, i32, i32) {
    %c0_i32 = arith.constant 0 : i32
    %c0_i32_0 = arith.constant 0 : i32
    return %arg0, %arg1, %c0_i32 : i32, i32, i32
  }
}

module attributes {stable_mosaic.version = 11 : i64} {
  func.func @_dist_project_kernel(%arg0: i32, %arg1: i32, %arg2: memref<1x16x64xf32, #tpu.memory_space<vmem>>, %arg3: memref<1x16x64xf32, #tpu.memory_space<vmem>>, %arg4: memref<64x128xf32, #tpu.memory_space<vmem>>, %arg5: memref<64x128xf32, #tpu.memory_space<vmem>>, %arg6: memref<1x128xf32, #tpu.memory_space<vmem>>, %arg7: memref<1x16x16xf32, #tpu.memory_space<vmem>>, %arg8: memref<1x16x128xbf16, #tpu.memory_space<vmem>>, %arg9: memref<1x16x128xf32, #tpu.memory_space<vmem>>) attributes {dimension_semantics = [#tpu.dimension_semantics<parallel>, #tpu.dimension_semantics<parallel>], iteration_bounds = array<i64: 2, 1>, scalar_prefetch = 0 : i64, scratch_operands = 0 : i64, tpu.core_type = #tpu.core_type<tc>, window_params = [{transform_indices = @transform_0, window_bounds = array<i64: 1, 16, 64>}, {transform_indices = @transform_1, window_bounds = array<i64: 1, 16, 64>}, {pipeline_mode = #tpu.pipeline_mode<synchronous>, transform_indices = @transform_2, window_bounds = array<i64: 64, 128>}, {pipeline_mode = #tpu.pipeline_mode<synchronous>, transform_indices = @transform_3, window_bounds = array<i64: 64, 128>}, {pipeline_mode = #tpu.pipeline_mode<synchronous>, transform_indices = @transform_4, window_bounds = array<i64: 1, 128>}, {transform_indices = @transform_5, window_bounds = array<i64: 1, 16, 16>}, {transform_indices = @transform_6, window_bounds = array<i64: 1, 16, 128>}, {transform_indices = @transform_7, window_bounds = array<i64: 1, 16, 128>}]} {
    %c0 = arith.constant 0 : index
    %c0_0 = arith.constant 0 : index
    %c0_1 = arith.constant 0 : index
    %0 = vector.load %arg2[%c0, %c0_0, %c0_1] : memref<1x16x64xf32, #tpu.memory_space<vmem>>, vector<1x16x64xf32>
    %1 = vector.shape_cast %0 : vector<1x16x64xf32> to vector<16x64xf32>
    %c0_2 = arith.constant 0 : index
    %c0_3 = arith.constant 0 : index
    %c0_4 = arith.constant 0 : index
    %2 = vector.load %arg3[%c0_2, %c0_3, %c0_4] : memref<1x16x64xf32, #tpu.memory_space<vmem>>, vector<1x16x64xf32>
    %3 = vector.shape_cast %2 : vector<1x16x64xf32> to vector<16x64xf32>
    %4 = arith.truncf %1 : vector<16x64xf32> to vector<16x64xbf16>
    %5 = arith.truncf %3 : vector<16x64xf32> to vector<16x64xbf16>
    %cst = arith.constant dense<0.000000e+00> : vector<16x16xf32>
    %6 = tpu.matmul %4, %5, %cst {dimension_numbers = #tpu.dot_dimension_numbers<[1], [1], [0], [0], [0, 0, 1, 0], [], []>} : vector<16x64xbf16>, vector<16x64xbf16>, vector<16x16xf32> -> vector<16x16xf32>
    %7 = arith.mulf %1, %1 : vector<16x64xf32>
    %cst_5 = arith.constant dense<0.000000e+00> : vector<16xf32>
    %8 = vector.multi_reduction <add>, %7, %cst_5 [1] : vector<16x64xf32> to vector<16xf32>
    %9 = vector.shape_cast %8 : vector<16xf32> to vector<16x1xf32>
    %cst_6 = arith.constant 1.000000e+00 : f32
    %10 = vector.broadcast %cst_6 : f32 to vector<1x64xf32>
    %11 = arith.mulf %3, %3 : vector<16x64xf32>
    %cst_7 = arith.constant dense<0.000000e+00> : vector<1x16xf32>
    %12 = tpu.matmul %10, %11, %cst_7 {dimension_numbers = #tpu.dot_dimension_numbers<[1], [1], [0], [0], [0, 0, 1, 0], [], []>} : vector<1x64xf32>, vector<16x64xf32>, vector<1x16xf32> -> vector<1x16xf32>
    %cst_8 = arith.constant 2.000000e+00 : f32
    %13 = vector.broadcast %cst_8 : f32 to vector<16x16xf32>
    %14 = arith.mulf %13, %6 : vector<16x16xf32>
    %15 = vector.broadcast %9 : vector<16x1xf32> to vector<16x16xf32>
    %16 = arith.subf %14, %15 : vector<16x16xf32>
    %17 = vector.broadcast %12 : vector<1x16xf32> to vector<16x16xf32>
    %18 = arith.subf %16, %17 : vector<16x16xf32>
    %c0_9 = arith.constant 0 : index
    %c0_10 = arith.constant 0 : index
    %c0_11 = arith.constant 0 : index
    %19 = vector.load %arg7[%c0_9, %c0_10, %c0_11] : memref<1x16x16xf32, #tpu.memory_space<vmem>>, vector<1x16x16xf32>
    %20 = vector.shape_cast %19 : vector<1x16x16xf32> to vector<16x16xf32>
    %21 = vector.shape_cast %18 : vector<16x16xf32> to vector<1x16x16xf32>
    tpu.vector_store %arg7[%c0_9, %c0_10, %c0_11], %21 {strides = array<i32>} : memref<1x16x16xf32, #tpu.memory_space<vmem>>, vector<1x16x16xf32>,
    %c0_12 = arith.constant 0 : index
    %c0_13 = arith.constant 0 : index
    %22 = vector.load %arg4[%c0_12, %c0_13] : memref<64x128xf32, #tpu.memory_space<vmem>>, vector<64x128xf32>
    %23 = arith.truncf %22 : vector<64x128xf32> to vector<64x128xbf16>
    %c0_14 = arith.constant 0 : index
    %c0_15 = arith.constant 0 : index
    %24 = vector.load %arg5[%c0_14, %c0_15] : memref<64x128xf32, #tpu.memory_space<vmem>>, vector<64x128xf32>
    %25 = arith.truncf %24 : vector<64x128xf32> to vector<64x128xbf16>
    %cst_16 = arith.constant dense<0.000000e+00> : vector<16x128xf32>
    %26 = tpu.matmul %4, %23, %cst_16 {dimension_numbers = #tpu.dot_dimension_numbers<[1], [0], [0], [1], [0, 0, 1, 1], [], []>} : vector<16x64xbf16>, vector<64x128xbf16>, vector<16x128xf32> -> vector<16x128xf32>
    %cst_17 = arith.constant dense<0.000000e+00> : vector<16x128xf32>
    %27 = tpu.matmul %4, %25, %cst_17 {dimension_numbers = #tpu.dot_dimension_numbers<[1], [0], [0], [1], [0, 0, 1, 1], [], []>} : vector<16x64xbf16>, vector<64x128xbf16>, vector<16x128xf32> -> vector<16x128xf32>
    %c0_18 = arith.constant 0 : index
    %c0_19 = arith.constant 0 : index
    %28 = vector.load %arg6[%c0_18, %c0_19] : memref<1x128xf32, #tpu.memory_space<vmem>>, vector<1x128xf32>
    %29 = vector.broadcast %28 : vector<1x128xf32> to vector<16x128xf32>
    %30 = arith.addf %27, %29 : vector<16x128xf32>
    %31 = arith.truncf %26 : vector<16x128xf32> to vector<16x128xbf16>
    %c0_20 = arith.constant 0 : index
    %c0_21 = arith.constant 0 : index
    %c0_22 = arith.constant 0 : index
    %32 = vector.load %arg8[%c0_20, %c0_21, %c0_22] : memref<1x16x128xbf16, #tpu.memory_space<vmem>>, vector<1x16x128xbf16>
    %33 = vector.shape_cast %32 : vector<1x16x128xbf16> to vector<16x128xbf16>
    %34 = vector.shape_cast %31 : vector<16x128xbf16> to vector<1x16x128xbf16>
    tpu.vector_store %arg8[%c0_20, %c0_21, %c0_22], %34 {strides = array<i32>} : memref<1x16x128xbf16, #tpu.memory_space<vmem>>, vector<1x16x128xbf16>,
    %c0_23 = arith.constant 0 : index
    %c0_24 = arith.constant 0 : index
    %c0_25 = arith.constant 0 : index
    %35 = vector.load %arg9[%c0_23, %c0_24, %c0_25] : memref<1x16x128xf32, #tpu.memory_space<vmem>>, vector<1x16x128xf32>
    %36 = vector.shape_cast %35 : vector<1x16x128xf32> to vector<16x128xf32>
    %37 = vector.shape_cast %30 : vector<16x128xf32> to vector<1x16x128xf32>
    tpu.vector_store %arg9[%c0_23, %c0_24, %c0_25], %37 {strides = array<i32>} : memref<1x16x128xf32, #tpu.memory_space<vmem>>, vector<1x16x128xf32>,
    return
  }
  func.func @transform_0(%arg0: i32, %arg1: i32) -> (i32, i32, i32) {
    %c0_i32 = arith.constant 0 : i32
    %c0_i32_0 = arith.constant 0 : i32
    return %arg0, %arg1, %c0_i32 : i32, i32, i32
  }
  func.func @transform_1(%arg0: i32, %arg1: i32) -> (i32, i32, i32) {
    %c0_i32 = arith.constant 0 : i32
    %c0_i32_0 = arith.constant 0 : i32
    %c0_i32_1 = arith.constant 0 : i32
    return %arg0, %c0_i32, %c0_i32_0 : i32, i32, i32
  }
  func.func @transform_2(%arg0: i32, %arg1: i32) -> (i32, i32) {
    %c0_i32 = arith.constant 0 : i32
    %c0_i32_0 = arith.constant 0 : i32
    %c0_i32_1 = arith.constant 0 : i32
    return %c0_i32, %c0_i32_0 : i32, i32
  }
  func.func @transform_3(%arg0: i32, %arg1: i32) -> (i32, i32) {
    %c0_i32 = arith.constant 0 : i32
    %c0_i32_0 = arith.constant 0 : i32
    %c0_i32_1 = arith.constant 0 : i32
    return %c0_i32, %c0_i32_0 : i32, i32
  }
  func.func @transform_4(%arg0: i32, %arg1: i32) -> (i32, i32) {
    %c0_i32 = arith.constant 0 : i32
    %c0_i32_0 = arith.constant 0 : i32
    %c0_i32_1 = arith.constant 0 : i32
    return %c0_i32, %c0_i32_0 : i32, i32
  }
  func.func @transform_5(%arg0: i32, %arg1: i32) -> (i32, i32, i32) {
    %c0_i32 = arith.constant 0 : i32
    %c0_i32_0 = arith.constant 0 : i32
    return %arg0, %arg1, %c0_i32 : i32, i32, i32
  }
  func.func @transform_6(%arg0: i32, %arg1: i32) -> (i32, i32, i32) {
    %c0_i32 = arith.constant 0 : i32
    %c0_i32_0 = arith.constant 0 : i32
    return %arg0, %arg1, %c0_i32 : i32, i32, i32
  }
  func.func @transform_7(%arg0: i32, %arg1: i32) -> (i32, i32, i32) {
    %c0_i32 = arith.constant 0 : i32
    %c0_i32_0 = arith.constant 0 : i32
    return %arg0, %arg1, %c0_i32 : i32, i32, i32
  }
}

module attributes {stable_mosaic.version = 11 : i64} {
  func.func @_combine_kernel(%arg0: i32, %arg1: i32, %arg2: memref<1x8x16x128xbf16, #tpu.memory_space<vmem>>, %arg3: memref<1x16x128xf32, #tpu.memory_space<vmem>>, %arg4: memref<1x16x128xf32, #tpu.memory_space<vmem>>) attributes {dimension_semantics = [#tpu.dimension_semantics<parallel>, #tpu.dimension_semantics<parallel>], iteration_bounds = array<i64: 2, 1>, scalar_prefetch = 0 : i64, scratch_operands = 0 : i64, tpu.core_type = #tpu.core_type<tc>, window_params = [{transform_indices = @transform_0, window_bounds = array<i64: 1, 8, 16, 128>}, {transform_indices = @transform_1, window_bounds = array<i64: 1, 16, 128>}, {transform_indices = @transform_2, window_bounds = array<i64: 1, 16, 128>}]} {
    %c0 = arith.constant 0 : index
    %c0_0 = arith.constant 0 : index
    %c0_1 = arith.constant 0 : index
    %c0_2 = arith.constant 0 : index
    %0 = vector.load %arg2[%c0, %c0_0, %c0_1, %c0_2] : memref<1x8x16x128xbf16, #tpu.memory_space<vmem>>, vector<1x8x16x128xbf16>
    %1 = vector.shape_cast %0 : vector<1x8x16x128xbf16> to vector<8x16x128xbf16>
    %2 = arith.extf %1 : vector<8x16x128xbf16> to vector<8x16x128xf32>
    %cst = arith.constant dense<0xFF800000> : vector<16x128xf32>
    %3 = vector.multi_reduction <maximumf>, %2, %cst [0] : vector<8x16x128xf32> to vector<16x128xf32>
    %c0_3 = arith.constant 0 : index
    %c0_4 = arith.constant 0 : index
    %c0_5 = arith.constant 0 : index
    %4 = vector.load %arg3[%c0_3, %c0_4, %c0_5] : memref<1x16x128xf32, #tpu.memory_space<vmem>>, vector<1x16x128xf32>
    %5 = vector.shape_cast %4 : vector<1x16x128xf32> to vector<16x128xf32>
    %6 = arith.addf %3, %5 : vector<16x128xf32>
    %cst_6 = arith.constant 0.000000e+00 : f32
    %7 = vector.broadcast %cst_6 : f32 to vector<16x128xf32>
    %8 = arith.cmpf ogt, %6, %7 : vector<16x128xf32>
    %cst_7 = arith.constant 2.000000e-01 : f32
    %9 = vector.broadcast %cst_7 : f32 to vector<16x128xf32>
    %10 = arith.mulf %9, %6 : vector<16x128xf32>
    %11 = arith.select %8, %6, %10 : vector<16x128xi1>, vector<16x128xf32>
    %c0_8 = arith.constant 0 : index
    %c0_9 = arith.constant 0 : index
    %c0_10 = arith.constant 0 : index
    %12 = vector.load %arg4[%c0_8, %c0_9, %c0_10] : memref<1x16x128xf32, #tpu.memory_space<vmem>>, vector<1x16x128xf32>
    %13 = vector.shape_cast %12 : vector<1x16x128xf32> to vector<16x128xf32>
    %14 = vector.shape_cast %11 : vector<16x128xf32> to vector<1x16x128xf32>
    tpu.vector_store %arg4[%c0_8, %c0_9, %c0_10], %14 {strides = array<i32>} : memref<1x16x128xf32, #tpu.memory_space<vmem>>, vector<1x16x128xf32>,
    return
  }
  func.func @transform_0(%arg0: i32, %arg1: i32) -> (i32, i32, i32, i32) {
    %c0_i32 = arith.constant 0 : i32
    %c0_i32_0 = arith.constant 0 : i32
    %c0_i32_1 = arith.constant 0 : i32
    return %arg0, %c0_i32, %arg1, %c0_i32_0 : i32, i32, i32, i32
  }
  func.func @transform_1(%arg0: i32, %arg1: i32) -> (i32, i32, i32) {
    %c0_i32 = arith.constant 0 : i32
    %c0_i32_0 = arith.constant 0 : i32
    return %arg0, %arg1, %c0_i32 : i32, i32, i32
  }
  func.func @transform_2(%arg0: i32, %arg1: i32) -> (i32, i32, i32) {
    %c0_i32 = arith.constant 0 : i32
    %c0_i32_0 = arith.constant 0 : i32
    return %arg0, %arg1, %c0_i32 : i32, i32, i32
  }
}

module attributes {stable_mosaic.version = 11 : i64} {
  func.func @_dist_project_kernel(%arg0: i32, %arg1: i32, %arg2: memref<1x16x128xf32, #tpu.memory_space<vmem>>, %arg3: memref<1x16x128xf32, #tpu.memory_space<vmem>>, %arg4: memref<128x256xf32, #tpu.memory_space<vmem>>, %arg5: memref<128x256xf32, #tpu.memory_space<vmem>>, %arg6: memref<1x256xf32, #tpu.memory_space<vmem>>, %arg7: memref<1x16x16xf32, #tpu.memory_space<vmem>>, %arg8: memref<1x16x256xbf16, #tpu.memory_space<vmem>>, %arg9: memref<1x16x256xf32, #tpu.memory_space<vmem>>) attributes {dimension_semantics = [#tpu.dimension_semantics<parallel>, #tpu.dimension_semantics<parallel>], iteration_bounds = array<i64: 2, 1>, scalar_prefetch = 0 : i64, scratch_operands = 0 : i64, tpu.core_type = #tpu.core_type<tc>, window_params = [{transform_indices = @transform_0, window_bounds = array<i64: 1, 16, 128>}, {transform_indices = @transform_1, window_bounds = array<i64: 1, 16, 128>}, {pipeline_mode = #tpu.pipeline_mode<synchronous>, transform_indices = @transform_2, window_bounds = array<i64: 128, 256>}, {pipeline_mode = #tpu.pipeline_mode<synchronous>, transform_indices = @transform_3, window_bounds = array<i64: 128, 256>}, {pipeline_mode = #tpu.pipeline_mode<synchronous>, transform_indices = @transform_4, window_bounds = array<i64: 1, 256>}, {transform_indices = @transform_5, window_bounds = array<i64: 1, 16, 16>}, {transform_indices = @transform_6, window_bounds = array<i64: 1, 16, 256>}, {transform_indices = @transform_7, window_bounds = array<i64: 1, 16, 256>}]} {
    %c0 = arith.constant 0 : index
    %c0_0 = arith.constant 0 : index
    %c0_1 = arith.constant 0 : index
    %0 = vector.load %arg2[%c0, %c0_0, %c0_1] : memref<1x16x128xf32, #tpu.memory_space<vmem>>, vector<1x16x128xf32>
    %1 = vector.shape_cast %0 : vector<1x16x128xf32> to vector<16x128xf32>
    %c0_2 = arith.constant 0 : index
    %c0_3 = arith.constant 0 : index
    %c0_4 = arith.constant 0 : index
    %2 = vector.load %arg3[%c0_2, %c0_3, %c0_4] : memref<1x16x128xf32, #tpu.memory_space<vmem>>, vector<1x16x128xf32>
    %3 = vector.shape_cast %2 : vector<1x16x128xf32> to vector<16x128xf32>
    %4 = arith.truncf %1 : vector<16x128xf32> to vector<16x128xbf16>
    %5 = arith.truncf %3 : vector<16x128xf32> to vector<16x128xbf16>
    %cst = arith.constant dense<0.000000e+00> : vector<16x16xf32>
    %6 = tpu.matmul %4, %5, %cst {dimension_numbers = #tpu.dot_dimension_numbers<[1], [1], [0], [0], [0, 0, 1, 0], [], []>} : vector<16x128xbf16>, vector<16x128xbf16>, vector<16x16xf32> -> vector<16x16xf32>
    %7 = arith.mulf %1, %1 : vector<16x128xf32>
    %cst_5 = arith.constant dense<0.000000e+00> : vector<16xf32>
    %8 = vector.multi_reduction <add>, %7, %cst_5 [1] : vector<16x128xf32> to vector<16xf32>
    %9 = vector.shape_cast %8 : vector<16xf32> to vector<16x1xf32>
    %cst_6 = arith.constant 1.000000e+00 : f32
    %10 = vector.broadcast %cst_6 : f32 to vector<1x128xf32>
    %11 = arith.mulf %3, %3 : vector<16x128xf32>
    %cst_7 = arith.constant dense<0.000000e+00> : vector<1x16xf32>
    %12 = tpu.matmul %10, %11, %cst_7 {dimension_numbers = #tpu.dot_dimension_numbers<[1], [1], [0], [0], [0, 0, 1, 0], [], []>} : vector<1x128xf32>, vector<16x128xf32>, vector<1x16xf32> -> vector<1x16xf32>
    %cst_8 = arith.constant 2.000000e+00 : f32
    %13 = vector.broadcast %cst_8 : f32 to vector<16x16xf32>
    %14 = arith.mulf %13, %6 : vector<16x16xf32>
    %15 = vector.broadcast %9 : vector<16x1xf32> to vector<16x16xf32>
    %16 = arith.subf %14, %15 : vector<16x16xf32>
    %17 = vector.broadcast %12 : vector<1x16xf32> to vector<16x16xf32>
    %18 = arith.subf %16, %17 : vector<16x16xf32>
    %c0_9 = arith.constant 0 : index
    %c0_10 = arith.constant 0 : index
    %c0_11 = arith.constant 0 : index
    %19 = vector.load %arg7[%c0_9, %c0_10, %c0_11] : memref<1x16x16xf32, #tpu.memory_space<vmem>>, vector<1x16x16xf32>
    %20 = vector.shape_cast %19 : vector<1x16x16xf32> to vector<16x16xf32>
    %21 = vector.shape_cast %18 : vector<16x16xf32> to vector<1x16x16xf32>
    tpu.vector_store %arg7[%c0_9, %c0_10, %c0_11], %21 {strides = array<i32>} : memref<1x16x16xf32, #tpu.memory_space<vmem>>, vector<1x16x16xf32>,
    %c0_12 = arith.constant 0 : index
    %c0_13 = arith.constant 0 : index
    %22 = vector.load %arg4[%c0_12, %c0_13] : memref<128x256xf32, #tpu.memory_space<vmem>>, vector<128x256xf32>
    %23 = arith.truncf %22 : vector<128x256xf32> to vector<128x256xbf16>
    %c0_14 = arith.constant 0 : index
    %c0_15 = arith.constant 0 : index
    %24 = vector.load %arg5[%c0_14, %c0_15] : memref<128x256xf32, #tpu.memory_space<vmem>>, vector<128x256xf32>
    %25 = arith.truncf %24 : vector<128x256xf32> to vector<128x256xbf16>
    %cst_16 = arith.constant dense<0.000000e+00> : vector<16x256xf32>
    %26 = tpu.matmul %4, %23, %cst_16 {dimension_numbers = #tpu.dot_dimension_numbers<[1], [0], [0], [1], [0, 0, 1, 1], [], []>} : vector<16x128xbf16>, vector<128x256xbf16>, vector<16x256xf32> -> vector<16x256xf32>
    %cst_17 = arith.constant dense<0.000000e+00> : vector<16x256xf32>
    %27 = tpu.matmul %4, %25, %cst_17 {dimension_numbers = #tpu.dot_dimension_numbers<[1], [0], [0], [1], [0, 0, 1, 1], [], []>} : vector<16x128xbf16>, vector<128x256xbf16>, vector<16x256xf32> -> vector<16x256xf32>
    %c0_18 = arith.constant 0 : index
    %c0_19 = arith.constant 0 : index
    %28 = vector.load %arg6[%c0_18, %c0_19] : memref<1x256xf32, #tpu.memory_space<vmem>>, vector<1x256xf32>
    %29 = vector.broadcast %28 : vector<1x256xf32> to vector<16x256xf32>
    %30 = arith.addf %27, %29 : vector<16x256xf32>
    %31 = arith.truncf %26 : vector<16x256xf32> to vector<16x256xbf16>
    %c0_20 = arith.constant 0 : index
    %c0_21 = arith.constant 0 : index
    %c0_22 = arith.constant 0 : index
    %32 = vector.load %arg8[%c0_20, %c0_21, %c0_22] : memref<1x16x256xbf16, #tpu.memory_space<vmem>>, vector<1x16x256xbf16>
    %33 = vector.shape_cast %32 : vector<1x16x256xbf16> to vector<16x256xbf16>
    %34 = vector.shape_cast %31 : vector<16x256xbf16> to vector<1x16x256xbf16>
    tpu.vector_store %arg8[%c0_20, %c0_21, %c0_22], %34 {strides = array<i32>} : memref<1x16x256xbf16, #tpu.memory_space<vmem>>, vector<1x16x256xbf16>,
    %c0_23 = arith.constant 0 : index
    %c0_24 = arith.constant 0 : index
    %c0_25 = arith.constant 0 : index
    %35 = vector.load %arg9[%c0_23, %c0_24, %c0_25] : memref<1x16x256xf32, #tpu.memory_space<vmem>>, vector<1x16x256xf32>
    %36 = vector.shape_cast %35 : vector<1x16x256xf32> to vector<16x256xf32>
    %37 = vector.shape_cast %30 : vector<16x256xf32> to vector<1x16x256xf32>
    tpu.vector_store %arg9[%c0_23, %c0_24, %c0_25], %37 {strides = array<i32>} : memref<1x16x256xf32, #tpu.memory_space<vmem>>, vector<1x16x256xf32>,
    return
  }
  func.func @transform_0(%arg0: i32, %arg1: i32) -> (i32, i32, i32) {
    %c0_i32 = arith.constant 0 : i32
    %c0_i32_0 = arith.constant 0 : i32
    return %arg0, %arg1, %c0_i32 : i32, i32, i32
  }
  func.func @transform_1(%arg0: i32, %arg1: i32) -> (i32, i32, i32) {
    %c0_i32 = arith.constant 0 : i32
    %c0_i32_0 = arith.constant 0 : i32
    %c0_i32_1 = arith.constant 0 : i32
    return %arg0, %c0_i32, %c0_i32_0 : i32, i32, i32
  }
  func.func @transform_2(%arg0: i32, %arg1: i32) -> (i32, i32) {
    %c0_i32 = arith.constant 0 : i32
    %c0_i32_0 = arith.constant 0 : i32
    %c0_i32_1 = arith.constant 0 : i32
    return %c0_i32, %c0_i32_0 : i32, i32
  }
  func.func @transform_3(%arg0: i32, %arg1: i32) -> (i32, i32) {
    %c0_i32 = arith.constant 0 : i32
    %c0_i32_0 = arith.constant 0 : i32
    %c0_i32_1 = arith.constant 0 : i32
    return %c0_i32, %c0_i32_0 : i32, i32
  }
  func.func @transform_4(%arg0: i32, %arg1: i32) -> (i32, i32) {
    %c0_i32 = arith.constant 0 : i32
    %c0_i32_0 = arith.constant 0 : i32
    %c0_i32_1 = arith.constant 0 : i32
    return %c0_i32, %c0_i32_0 : i32, i32
  }
  func.func @transform_5(%arg0: i32, %arg1: i32) -> (i32, i32, i32) {
    %c0_i32 = arith.constant 0 : i32
    %c0_i32_0 = arith.constant 0 : i32
    return %arg0, %arg1, %c0_i32 : i32, i32, i32
  }
  func.func @transform_6(%arg0: i32, %arg1: i32) -> (i32, i32, i32) {
    %c0_i32 = arith.constant 0 : i32
    %c0_i32_0 = arith.constant 0 : i32
    return %arg0, %arg1, %c0_i32 : i32, i32, i32
  }
  func.func @transform_7(%arg0: i32, %arg1: i32) -> (i32, i32, i32) {
    %c0_i32 = arith.constant 0 : i32
    %c0_i32_0 = arith.constant 0 : i32
    return %arg0, %arg1, %c0_i32 : i32, i32, i32
  }
}

module attributes {stable_mosaic.version = 11 : i64} {
  func.func @_combine_kernel(%arg0: i32, %arg1: i32, %arg2: memref<1x8x16x256xbf16, #tpu.memory_space<vmem>>, %arg3: memref<1x16x256xf32, #tpu.memory_space<vmem>>, %arg4: memref<1x16x256xf32, #tpu.memory_space<vmem>>) attributes {dimension_semantics = [#tpu.dimension_semantics<parallel>, #tpu.dimension_semantics<parallel>], iteration_bounds = array<i64: 2, 1>, scalar_prefetch = 0 : i64, scratch_operands = 0 : i64, tpu.core_type = #tpu.core_type<tc>, window_params = [{transform_indices = @transform_0, window_bounds = array<i64: 1, 8, 16, 256>}, {transform_indices = @transform_1, window_bounds = array<i64: 1, 16, 256>}, {transform_indices = @transform_2, window_bounds = array<i64: 1, 16, 256>}]} {
    %c0 = arith.constant 0 : index
    %c0_0 = arith.constant 0 : index
    %c0_1 = arith.constant 0 : index
    %c0_2 = arith.constant 0 : index
    %0 = vector.load %arg2[%c0, %c0_0, %c0_1, %c0_2] : memref<1x8x16x256xbf16, #tpu.memory_space<vmem>>, vector<1x8x16x256xbf16>
    %1 = vector.shape_cast %0 : vector<1x8x16x256xbf16> to vector<8x16x256xbf16>
    %2 = arith.extf %1 : vector<8x16x256xbf16> to vector<8x16x256xf32>
    %cst = arith.constant dense<0xFF800000> : vector<16x256xf32>
    %3 = vector.multi_reduction <maximumf>, %2, %cst [0] : vector<8x16x256xf32> to vector<16x256xf32>
    %c0_3 = arith.constant 0 : index
    %c0_4 = arith.constant 0 : index
    %c0_5 = arith.constant 0 : index
    %4 = vector.load %arg3[%c0_3, %c0_4, %c0_5] : memref<1x16x256xf32, #tpu.memory_space<vmem>>, vector<1x16x256xf32>
    %5 = vector.shape_cast %4 : vector<1x16x256xf32> to vector<16x256xf32>
    %6 = arith.addf %3, %5 : vector<16x256xf32>
    %cst_6 = arith.constant 0.000000e+00 : f32
    %7 = vector.broadcast %cst_6 : f32 to vector<16x256xf32>
    %8 = arith.cmpf ogt, %6, %7 : vector<16x256xf32>
    %cst_7 = arith.constant 2.000000e-01 : f32
    %9 = vector.broadcast %cst_7 : f32 to vector<16x256xf32>
    %10 = arith.mulf %9, %6 : vector<16x256xf32>
    %11 = arith.select %8, %6, %10 : vector<16x256xi1>, vector<16x256xf32>
    %c0_8 = arith.constant 0 : index
    %c0_9 = arith.constant 0 : index
    %c0_10 = arith.constant 0 : index
    %12 = vector.load %arg4[%c0_8, %c0_9, %c0_10] : memref<1x16x256xf32, #tpu.memory_space<vmem>>, vector<1x16x256xf32>
    %13 = vector.shape_cast %12 : vector<1x16x256xf32> to vector<16x256xf32>
    %14 = vector.shape_cast %11 : vector<16x256xf32> to vector<1x16x256xf32>
    tpu.vector_store %arg4[%c0_8, %c0_9, %c0_10], %14 {strides = array<i32>} : memref<1x16x256xf32, #tpu.memory_space<vmem>>, vector<1x16x256xf32>,
    return
  }
  func.func @transform_0(%arg0: i32, %arg1: i32) -> (i32, i32, i32, i32) {
    %c0_i32 = arith.constant 0 : i32
    %c0_i32_0 = arith.constant 0 : i32
    %c0_i32_1 = arith.constant 0 : i32
    return %arg0, %c0_i32, %arg1, %c0_i32_0 : i32, i32, i32, i32
  }
  func.func @transform_1(%arg0: i32, %arg1: i32) -> (i32, i32, i32) {
    %c0_i32 = arith.constant 0 : i32
    %c0_i32_0 = arith.constant 0 : i32
    return %arg0, %arg1, %c0_i32 : i32, i32, i32
  }
  func.func @transform_2(%arg0: i32, %arg1: i32) -> (i32, i32, i32) {
    %c0_i32 = arith.constant 0 : i32
    %c0_i32_0 = arith.constant 0 : i32
    return %arg0, %arg1, %c0_i32 : i32, i32, i32
  }
}

</mosaic_0001>

<bundles_post_ra>
// kernel: dgcnn_feature_space.8
= control target key start
LH: loop header
LB: loop body
LE: loop exit
PB: predicated region body
PF: predicated region fallthrough
CT: control target
= control target key end

     0   :  { %s836_s24 = smov 0   ;;  %s838_s25 = smov 0   ;;  %s910_s0 = inlined_call_operand.vmem [shape: f32[2,16,3], index: 0, kind: input, shape index: {}, may-alias: {0,1}]   ;;  %s911_s1 = inlined_call_operand.vmem [shape: f32[2,16,3], index: 1, kind: input, shape index: {}, may-alias: {0,1}]   ;;  %s912_s2 = inlined_call_operand.vmem [shape: f32[3,64], index: 2, kind: input, shape index: {}]   ;;  %s913_s3 = inlined_call_operand.vmem [shape: f32[3,64], index: 3, kind: input, shape index: {}]   ;;  %s914_s4 = inlined_call_operand.vmem [shape: f32[1,64], index: 4, kind: input, shape index: {}]   ;;  %s915_s5 = inlined_call_operand.vmem [shape: f32[2,16,16], index: 5, kind: output, shape index: {0}]   ;;  %s916_s6 = inlined_call_operand.vmem [shape: bf16[2,16,64], index: 6, kind: output, shape index: {1}]   ;;  %s917_s7 = inlined_call_operand.vmem [shape: f32[2,16,64], index: 7, kind: output, shape index: {2}]  }
   0x1   :  { %s840_s26 = smov 0  }
   0x2 LB: > { %s30_s27 = sadd.s32 1, %s788_s25  ;;  %p719_p0 = scmp.ge.s32.totalorder %s792_s26, 1  ;;  %s792_s26 = sphi %s840_s26, %s18_s26   ;;  %s788_s25 = sphi %s838_s25, %s919_s25   ;;  %s784_s24 = sphi %s836_s24, %s918_s24  }
   0x3   : > { %p32_p1 = scmp.ge.s32.totalorder %s30_s27, 2  ;;  %p277_p2 = scmp.lt.s32.totalorder %s792_s26, 3 }
   0x5   : > { %s921_s27 = smov (%p32_p1, %s30_s27), 0  ;;  %p278_p3 = pnand %p719_p0, %p277_p2 }
   0x6   : > { %p341_p4 = scmp.lt.s32.totalorder (!%p278_p3), %s784_s24, 1 }
   0x7   : > { %281 = sbr.rel (%p278_p3) target bundleno = 168 (0xa8), region = 40 }
   0xc   : > { %v462_v0 = vld [vmem:[%s912_s2] sm:$0x7]  ;;  %vm466_vm0 = vcmask 1040384   ;;  %vm467_vm1 = vcmask 1041408   ;;  %v794_v2 = vmov 65535   ;;  %s923_s24 = smov (!%p341_p4, %s784_s24), 1 }
   0xd   : > { %v463_v1 = vpack.c.bf16 %v462_v0, %v462_v0  ;;  %v468_v3 = vsel %vm466_vm0, 4294967295, %v794_v2  ;;  %v464_v4 = vld [vmem:[%s913_s3] sm:$0x7]  ;;  %s863_s9 = sshll.u32 %s923_s24, 4  ;;  %vm392_vm2 = vcmask 23552   ;;  %v795_v22 = vmov 1.0  }
   0xe   : > { %v469_v5 = vsel %vm467_vm1, %v468_v3, 0  ;;  %v465_v6 = vpack.c.bf16 %v464_v4, %v464_v4  ;;  %s348_s12 = scalar_lea.vmem %s910_s0, %s863_s9  ;;  %s354_s15 = scalar_lea.vmem %s911_s1, %s863_s9  ;;  %v769_v23 = vld [vmem:[%s914_s4] ss:$0 sm:$0xff]  ;;  %vm510_vm3 = vcmask 519168   ;;  %vm513_vm4 = vcmask 523264  }
   0xf   : > { %v471_v7 = vand.u32 %v469_v5, %v463_v1  ;;  %v386_v9 = vld [vmem:[%s348_s12] sm:$0xff]  ;;  %v387_v10 = vld [vmem:[%s348_s12 + $0x8] sm:$0xff]  ;;  %s741_s16 = sshll.u32 %s923_s24, 3  ;;  %s383_s28 = scalar_lea.vmem %s917_s7, %s863_s9  ;;  %vm459_vm5 = vcmask 130048  }
  0x10   : > { %v492_v8 = vand.u32 %v469_v5, %v465_v6  ;;  %v388_v11 = vld [vmem:[%s354_s15] sm:$0xff]  ;;  %v390_v12 = vpack.c.bf16 %v387_v10, %v386_v9  ;;  %v389_v13 = vld [vmem:[%s354_s15 + $0x8] sm:$0xff]  ;;  %v413_v14 = vmul.f32 %v386_v9, %v386_v9  ;;  %v414_v20 = vmul.f32 %v387_v10, %v387_v10  ;;  %s373_s21 = scalar_lea.vmem %s916_s6, %s741_s16  ;;  %s363_s30 = scalar_lea.vmem %s915_s5, %s863_s9 }
  0x11   : > { %480 = vmatpush.bf16.msra.mxu2 %v471_v7  ;;  %v391_v15 = vpack.c.bf16 %v389_v13, %v388_v11  ;;  %v422_v16 = vmul.f32 %v389_v13, %v389_v13  ;;  %v421_v19 = vmul.f32 %v388_v11, %v388_v11 }
  0x12   : > { %501 = vmatpush.bf16.msra.mxu3 %v492_v8  ;;  %v415_v17 = vsel %vm392_vm2, %v413_v14, 0.0  ;;  %v418_v21 = vsel %vm392_vm2, %v414_v20, 0.0 }
  0x13   : > { %v397_v18 = vsel %vm392_vm2, %v391_v15, 0  ;;  %731 = vmatpush.xpose.msk.msra.mxu1 %vm392_vm2, %v422_v16  ;;  %416 = vadd.xlane.f32.xlu0 %v415_v17 }
  0x14   : > { %734 = vmatmul.msk.bf16.vlgmr.msra.gmra.mxu2 %vm392_vm2, %v390_v12  ;;  %406 = vmatpush.bf16.xpose.msra.mxu0 %v397_v18 }
  0x15   : > { %735 = vmatmul.msk.bf16.vlgmr.msra.gmra.mxu3 %vm392_vm2, %v390_v12 }
  0x17   : > { %732 = vmatpush.xpose.msk.msra.mxu1 %vm392_vm2, %v421_v19 }
  0x1a   : > { %733 = vmatmul.msk.f32.vlgmr.msra.gmra.mxu1 %vm392_vm2, %v795_v22 }
  0x1b   : > { %730 = vmatmul.msk.bf16.vlgmr.msra.gmra.mxu0 %vm392_vm2, %v390_v12  ;;  %419 = vadd.xlane.f32.xlu0 %v418_v21 }
  0x86   : > { %v417_v28 = vpop.xlane.xlu0 %416 }
  0x8e   : > { %v420_v40 = vpop.xlane.xlu0 %419 }
  0x97   : > { %v482_v24 = vpop.f32.mrf.mxu2  ;;  %v449_v29 = vpop.f32.mrf.mxu1 }
  0x98   : > { %v503_v25 = vpop.f32.mrf.mxu3  ;;  %v508_v26 = vpack.c.bf16 %v482_v24, %v482_v24  ;;  %v408_v30 = vpop.f32.mrf.mxu0  ;;  %v456_v32 = vperm.slane %v449_v29, 0 }
  0x99   : > { %v504_v27 = vadd.f32 %v769_v23, %v503_v25  ;;  %v452_v31 = vmul.f32 2.0, %v408_v30 }
  0x9a   : > { %511 = vst.msk [vmem:[%s373_s21] sm:$0xf] %vm510_vm3, %v508_v26 }
  0x9b   : > { %514 = vst.msk [vmem:[%s383_s28] sm:$0xff] %vm513_vm4, %v504_v27  ;;  %v454_v33 = vsub.f32 %v452_v31, %v417_v28 }
  0x9d   : > { %v457_v34 = vsub.f32 %v454_v33, %v456_v32 }
  0x9f   : > { %v484_v35 = vpop.f32.mrf.mxu2  ;;  %460 = vst.msk [vmem:[%s363_s30] sm:$0xff] %vm459_vm5, %v457_v34 }
  0xa0   : > { %v505_v36 = vpop.f32.mrf.mxu3  ;;  %v509_v37 = vpack.c.bf16 %v484_v35, %v484_v35  ;;  %v410_v39 = vpop.f32.mrf.mxu0 }
  0xa1   : > { %v506_v38 = vadd.f32 %v769_v23, %v505_v36  ;;  %v453_v41 = vmul.f32 2.0, %v410_v39 }
  0xa2   : > { %512 = vst.msk [vmem:[%s373_s21 + $0x4] sm:$0xf] %vm510_vm3, %v509_v37 }
  0xa3   : > { %515 = vst.msk [vmem:[%s383_s28 + $0x8] sm:$0xff] %vm513_vm4, %v506_v38  ;;  %v455_v42 = vsub.f32 %v453_v41, %v420_v40 }
  0xa5   : > { %v458_v43 = vsub.f32 %v455_v42, %v456_v32 }
  0xa7   : > { %461 = vst.msk [vmem:[%s363_s30 + $0x8] sm:$0xff] %vm459_vm5, %v458_v43 }
  0xa8 PF: > { %s18_s26 = sadd.s32 1, %s792_s26   ;;  %s918_s24 = smov %s788_s25 }
  0xa9   : > { %p15_p5 = scmp.ge.s32.totalorder %s18_s26, 4   ;;  %s919_s25 = smov %s921_s27 }
  0xab   :  { %17 = sbr.rel (!%p15_p5) target bundleno = 2 (0x2), region = 97 }

// kernel: dgcnn_feature_space.9
= control target key start
LH: loop header
LB: loop body
LE: loop exit
PB: predicated region body
PF: predicated region fallthrough
CT: control target
= control target key end

     0   :  { %s517_s9 = smov 0   ;;  %s519_s10 = smov 0   ;;  %s579_s0 = inlined_call_operand.vmem [shape: bf16[2,8,16,64], index: 0, kind: input, shape index: {}]   ;;  %s580_s1 = inlined_call_operand.vmem [shape: f32[2,16,64], index: 1, kind: input, shape index: {}]   ;;  %s581_s2 = inlined_call_operand.vmem [shape: f32[2,16,64], index: 2, kind: output, shape index: {}]  }
   0x1   :  { %s521_s11 = smov 0  }
   0x2 LB: > { %s24_s12 = sadd.s32 1, %s496_s10  ;;  %p403_p0 = scmp.ge.s32.totalorder %s500_s11, 1  ;;  %s500_s11 = sphi %s521_s11, %s12_s11   ;;  %s496_s10 = sphi %s519_s10, %s583_s10   ;;  %s492_s9 = sphi %s517_s9, %s582_s9  }
   0x3   : > { %p26_p1 = scmp.ge.s32.totalorder %s24_s12, 2  ;;  %p150_p2 = scmp.lt.s32.totalorder %s500_s11, 3 }
   0x5   : > { %s585_s12 = smov (%p26_p1, %s24_s12), 0  ;;  %p151_p3 = pnand %p403_p0, %p150_p2 }
   0x6   : > { %p190_p4 = scmp.lt.s32.totalorder (!%p151_p3), %s492_s9, 1 }
   0x7   : > { %154 = sbr.rel (%p151_p3) target bundleno = 38 (0x26), region = 28 }
   0xc   : > { %s587_s9 = smov (!%p190_p4, %s492_s9), 1  ;;  %vm251_vm0 = vcmask 523264  }
   0xd   : > { %s412_s13 = sshll.u32 %s587_s9, 6  ;;  %s413_s17 = sshll.u32 %s587_s9, 4 }
   0xe   : > { %s197_s16 = scalar_lea.vmem %s579_s0, %s412_s13  ;;  %s207_s20 = scalar_lea.vmem %s580_s1, %s413_s17 }
   0xf   : > { %v416_v0 = vld [vmem:[%s197_s16] sm:$0xff]   ;;  %v447_v1 = vld [vmem:[%s197_s16 + $0x8] sm:$0xff]   ;;  %v448_v2 = vld [vmem:[%s197_s16 + $0x10] sm:$0xff]   ;;  %s217_s23 = scalar_lea.vmem %s581_s2, %s413_s17 }
  0x10   : > { %v417_v3 = vunpack.c.l.bf16 %v416_v0  ;;  %v418_v4 = vunpack.c.h.bf16 %v416_v0  ;;  %v421_v5 = vunpack.c.l.bf16 %v447_v1  ;;  %v422_v6 = vunpack.c.h.bf16 %v447_v1  ;;  %v449_v7 = vld [vmem:[%s197_s16 + $0x18] sm:$0xff]   ;;  %v450_v8 = vld [vmem:[%s197_s16 + $0x20] sm:$0xff]   ;;  %v451_v9 = vld [vmem:[%s197_s16 + $0x28] sm:$0xff]  }
  0x11   : > { %v425_v10 = vunpack.c.l.bf16 %v448_v2  ;;  %v426_v11 = vunpack.c.h.bf16 %v448_v2  ;;  %v429_v12 = vunpack.c.l.bf16 %v449_v7  ;;  %v430_v13 = vunpack.c.h.bf16 %v449_v7  ;;  %v452_v14 = vld [vmem:[%s197_s16 + $0x30] sm:$0xff]   ;;  %v453_v15 = vld [vmem:[%s197_s16 + $0x38] sm:$0xff]   ;;  %v282_v50 = vld [vmem:[%s207_s20] sm:$0xff] }
  0x12   : > { %v433_v16 = vunpack.c.l.bf16 %v450_v8  ;;  %v434_v17 = vunpack.c.h.bf16 %v450_v8  ;;  %v437_v18 = vunpack.c.l.bf16 %v451_v9  ;;  %v438_v19 = vunpack.c.h.bf16 %v451_v9  ;;  %v283_v54 = vld [vmem:[%s207_s20 + $0x8] sm:$0xff] }
  0x13   : > { %v441_v20 = vunpack.c.l.bf16 %v452_v14  ;;  %v442_v21 = vunpack.c.h.bf16 %v452_v14  ;;  %v445_v22 = vunpack.c.l.bf16 %v453_v15  ;;  %v446_v23 = vunpack.c.h.bf16 %v453_v15 }
  0x14   : > { %v252_v24 = vsel %vm251_vm0, %v417_v3, -inf  ;;  %v253_v25 = vsel %vm251_vm0, %v421_v5, -inf  ;;  %v254_v26 = vsel %vm251_vm0, %v425_v10, -inf  ;;  %v256_v27 = vsel %vm251_vm0, %v429_v12, -inf }
  0x15   : > { %v255_v28 = vmax.f32 %v252_v24, %v254_v26  ;;  %v257_v29 = vmax.f32 %v253_v25, %v256_v27  ;;  %v258_v30 = vsel %vm251_vm0, %v433_v16, -inf  ;;  %v260_v31 = vsel %vm251_vm0, %v437_v18, -inf }
  0x16   : > { %v262_v32 = vsel %vm251_vm0, %v441_v20, -inf  ;;  %v264_v33 = vsel %vm251_vm0, %v445_v22, -inf  ;;  %v267_v34 = vsel %vm251_vm0, %v418_v4, -inf  ;;  %v268_v35 = vsel %vm251_vm0, %v422_v6, -inf }
  0x17   : > { %v259_v36 = vmax.f32 %v255_v28, %v258_v30  ;;  %v261_v37 = vmax.f32 %v257_v29, %v260_v31  ;;  %v269_v38 = vsel %vm251_vm0, %v426_v11, -inf  ;;  %v271_v39 = vsel %vm251_vm0, %v430_v13, -inf }
  0x18   : > { %v270_v40 = vmax.f32 %v267_v34, %v269_v38  ;;  %v272_v41 = vmax.f32 %v268_v35, %v271_v39  ;;  %v273_v42 = vsel %vm251_vm0, %v434_v17, -inf  ;;  %v275_v43 = vsel %vm251_vm0, %v438_v19, -inf }
  0x19   : > { %v263_v44 = vmax.f32 %v259_v36, %v262_v32  ;;  %v265_v45 = vmax.f32 %v261_v37, %v264_v33  ;;  %v277_v46 = vsel %vm251_vm0, %v442_v21, -inf  ;;  %v279_v47 = vsel %vm251_vm0, %v446_v23, -inf }
  0x1a   : > { %v274_v48 = vmax.f32 %v270_v40, %v273_v42  ;;  %v276_v49 = vmax.f32 %v272_v41, %v275_v43 }
  0x1b   : > { %v266_v51 = vmax.f32 %v263_v44, %v265_v45 }
  0x1c   : > { %v278_v52 = vmax.f32 %v274_v48, %v277_v46  ;;  %v280_v53 = vmax.f32 %v276_v49, %v279_v47 }
  0x1d   : > { %v284_v55 = vadd.f32 %v282_v50, %v266_v51 }
  0x1e   : > { %v281_v56 = vmax.f32 %v278_v52, %v280_v53 }
  0x1f   : > { %vm286_vm1 = vcmp.gt.f32.partialorder %v284_v55, 0.0  ;;  %v288_v57 = vmul.f32 0.2, %v284_v55 }
  0x20   : > { %v285_v58 = vadd.f32 %v283_v54, %v281_v56 }
  0x21   : > { %v290_v59 = vsel %vm286_vm1, %v284_v55, %v288_v57 }
  0x22   : > { %292 = vst.msk [vmem:[%s217_s23] sm:$0xff] %vm251_vm0, %v290_v59  ;;  %vm287_vm2 = vcmp.gt.f32.partialorder %v285_v58, 0.0  ;;  %v289_v60 = vmul.f32 0.2, %v285_v58 }
  0x24   : > { %v291_v61 = vsel %vm287_vm2, %v285_v58, %v289_v60 }
  0x25   : > { %293 = vst.msk [vmem:[%s217_s23 + $0x8] sm:$0xff] %vm251_vm0, %v291_v61 }
  0x26 PF: > { %s12_s11 = sadd.s32 1, %s500_s11   ;;  %s582_s9 = smov %s496_s10 }
  0x27   : > { %p9_p5 = scmp.ge.s32.totalorder %s12_s11, 4   ;;  %s583_s10 = smov %s585_s12 }
  0x29   :  { %11 = sbr.rel (!%p9_p5) target bundleno = 2 (0x2), region = 61 }

// kernel: dgcnn_feature_space.10
= control target key start
LH: loop header
LB: loop body
LE: loop exit
PB: predicated region body
PF: predicated region fallthrough
CT: control target
= control target key end

     0   :  { %s843_s24 = smov 0   ;;  %s845_s25 = smov 0   ;;  %s961_s0 = inlined_call_operand.vmem [shape: f32[2,16,64], index: 0, kind: input, shape index: {}, may-alias: {0,1}]   ;;  %s962_s1 = inlined_call_operand.vmem [shape: f32[2,16,64], index: 1, kind: input, shape index: {}, may-alias: {0,1}]   ;;  %s963_s2 = inlined_call_operand.vmem [shape: f32[64,64], index: 2, kind: input, shape index: {}]   ;;  %s964_s3 = inlined_call_operand.vmem [shape: f32[64,64], index: 3, kind: input, shape index: {}]   ;;  %s965_s4 = inlined_call_operand.vmem [shape: f32[1,64], index: 4, kind: input, shape index: {}]   ;;  %s966_s5 = inlined_call_operand.vmem [shape: f32[2,16,16], index: 5, kind: output, shape index: {0}]   ;;  %s967_s6 = inlined_call_operand.vmem [shape: bf16[2,16,64], index: 6, kind: output, shape index: {1}]   ;;  %s968_s7 = inlined_call_operand.vmem [shape: f32[2,16,64], index: 7, kind: output, shape index: {2}]  }
   0x1   :  { %s847_s26 = smov 0  }
   0x2 LB: > { %s30_s27 = sadd.s32 1, %s796_s25  ;;  %p728_p0 = scmp.ge.s32.totalorder %s800_s26, 1  ;;  %s800_s26 = sphi %s847_s26, %s18_s26   ;;  %s796_s25 = sphi %s845_s25, %s970_s25   ;;  %s792_s24 = sphi %s843_s24, %s969_s24  }
   0x3   : > { %p32_p1 = scmp.ge.s32.totalorder %s30_s27, 2  ;;  %p277_p2 = scmp.lt.s32.totalorder %s800_s26, 3 }
   0x5   : > { %s972_s27 = smov (%p32_p1, %s30_s27), 0  ;;  %p278_p3 = pnand %p728_p0, %p277_p2 }
   0x6   : > { %p341_p4 = scmp.lt.s32.totalorder (!%p278_p3), %s792_s24, 1 }
   0x7   : > { %281 = sbr.rel (%p278_p3) target bundleno = 174 (0xae), region = 40 }
   0xc   : > { %v468_v0 = vld [vmem:[%s963_s2 + $0x30] sm:$0xff]  ;;  %v469_v1 = vld [vmem:[%s963_s2 + $0x38] sm:$0xff]  ;;  %v466_v5 = vld [vmem:[%s963_s2 + $0x20] sm:$0xff]  ;;  %s974_s24 = smov (!%p341_p4, %s792_s24), 1  ;;  %vm392_vm0 = vcmask 523264   ;;  %v802_v37 = vmov 1.0  }
   0xd   : > { %v480_v2 = vld [vmem:[%s964_s3 + $0x30] sm:$0xff]  ;;  %v473_v3 = vpack.c.bf16 %v469_v1, %v468_v0  ;;  %v481_v4 = vld [vmem:[%s964_s3 + $0x38] sm:$0xff]  ;;  %v467_v6 = vld [vmem:[%s963_s2 + $0x28] sm:$0xff]  ;;  %s888_s21 = sshll.u32 %s974_s24, 4  ;;  %vm459_vm1 = vcmask 130048   ;;  %s750_s10 = sshll.u32 %s974_s24, 3 }
   0xe   : > { %v485_v7 = vpack.c.bf16 %v481_v4, %v480_v2  ;;  %v478_v8 = vld [vmem:[%s964_s3 + $0x20] sm:$0xff]  ;;  %v479_v9 = vld [vmem:[%s964_s3 + $0x28] sm:$0xff]  ;;  %v472_v10 = vpack.c.bf16 %v467_v6, %v466_v5  ;;  %v464_v12 = vld [vmem:[%s963_s2 + $0x10] sm:$0xff]  ;;  %s354_s9 = scalar_lea.vmem %s962_s1, %s888_s21  ;;  %s348_s16 = scalar_lea.vmem %s961_s0, %s888_s21  ;;  %vm520_vm2 = vcmask 519168  }
   0xf   : > { %490 = vmatpush.bf16.msra.mxu2 %v473_v3  ;;  %v484_v11 = vpack.c.bf16 %v479_v9, %v478_v8  ;;  %v465_v13 = vld [vmem:[%s963_s2 + $0x18] sm:$0xff]  ;;  %v476_v14 = vld [vmem:[%s964_s3 + $0x10] sm:$0xff]  ;;  %v388_v16 = vld [vmem:[%s354_s9] sm:$0xff]  ;;  %s373_s15 = scalar_lea.vmem %s967_s6, %s750_s10  ;;  %s383_s18 = scalar_lea.vmem %s968_s7, %s888_s21 }
  0x10   : > { %508 = vmatpush.bf16.msra.mxu3 %v485_v7  ;;  %v477_v15 = vld [vmem:[%s964_s3 + $0x18] sm:$0xff]  ;;  %v389_v17 = vld [vmem:[%s354_s9 + $0x8] sm:$0xff]  ;;  %v386_v18 = vld [vmem:[%s348_s16] sm:$0xff]  ;;  %v471_v20 = vpack.c.bf16 %v465_v13, %v464_v12  ;;  %v421_v27 = vmul.f32 %v388_v16, %v388_v16  ;;  %s363_s9 = scalar_lea.vmem %s966_s5, %s888_s21 }
  0x11   : > { %v391_v19 = vpack.c.bf16 %v389_v17, %v388_v16  ;;  %v422_v21 = vmul.f32 %v389_v17, %v389_v17  ;;  %v413_v22 = vmul.f32 %v386_v18, %v386_v18  ;;  %v483_v23 = vpack.c.bf16 %v477_v15, %v476_v14  ;;  %v462_v24 = vld [vmem:[%s963_s2] sm:$0xff]  ;;  %v463_v25 = vld [vmem:[%s963_s2 + $0x8] sm:$0xff] }
  0x12   : > { %v474_v28 = vld [vmem:[%s964_s3] sm:$0xff]  ;;  %v475_v29 = vld [vmem:[%s964_s3 + $0x8] sm:$0xff]  ;;  %v470_v32 = vpack.c.bf16 %v463_v25, %v462_v24 }
  0x13   : > { %491 = vmatpush.bf16.msra.mxu2 %v472_v10  ;;  %v397_v26 = vsel %vm392_vm0, %v391_v19, 0  ;;  %740 = vmatpush.xpose.msk.msra.mxu1 %vm392_vm0, %v422_v21  ;;  %v415_v30 = vsel %vm392_vm0, %v413_v22, 0.0  ;;  %v387_v31 = vld [vmem:[%s348_s16 + $0x8] sm:$0xff]  ;;  %v482_v34 = vpack.c.bf16 %v475_v29, %v474_v28  ;;  %v777_v45 = vld [vmem:[%s965_s4] ss:$0 sm:$0xff] }
  0x14   : > { %509 = vmatpush.bf16.msra.mxu3 %v484_v11  ;;  %406 = vmatpush.bf16.xpose.msra.mxu0 %v397_v26  ;;  %v414_v33 = vmul.f32 %v387_v31, %v387_v31  ;;  %v390_v35 = vpack.c.bf16 %v387_v31, %v386_v18 }
  0x15   : > { %416 = vadd.xlane.f32.xlu0 %v415_v30 }
  0x16   : > { %v418_v36 = vsel %vm392_vm0, %v414_v33, 0.0 }
  0x17   : > { %492 = vmatpush.bf16.msra.mxu2 %v471_v20  ;;  %741 = vmatpush.xpose.msk.msra.mxu1 %vm392_vm0, %v421_v27 }
  0x18   : > { %510 = vmatpush.bf16.msra.mxu3 %v483_v23 }
  0x1a   : > { %742 = vmatmul.msk.f32.vlgmr.msra.gmra.mxu1 %vm392_vm0, %v802_v37 }
  0x1b   : > { %493 = vmatpush.bf16.msra.mxu2 %v470_v32  ;;  %739 = vmatmul.msk.bf16.vlgmr.msra.gmra.mxu0 %vm392_vm0, %v390_v35 }
  0x1c   : > { %511 = vmatpush.bf16.msra.mxu3 %v482_v34 }
  0x1d   : > { %419 = vadd.xlane.f32.xlu0 %v418_v36 }
  0x1e   : > { %743 = vmatmul.msk.bf16.vlgmr.msra.gmra.mxu2 %vm392_vm0, %v390_v35 }
  0x1f   : > { %744 = vmatmul.msk.bf16.vlgmr.msra.gmra.mxu3 %vm392_vm0, %v390_v35 }
  0x88   : > { %v417_v38 = vpop.xlane.xlu0 %416 }
  0x90   : > { %v420_v47 = vpop.xlane.xlu0 %419 }
  0x97   : > { %v449_v39 = vpop.f32.mrf.mxu1 }
  0x98   : > { %v408_v40 = vpop.f32.mrf.mxu0  ;;  %v456_v42 = vperm.slane %v449_v39, 0 }
  0x99   : > { %v452_v41 = vmul.f32 2.0, %v408_v40 }
  0x9b   : > { %v454_v43 = vsub.f32 %v452_v41, %v417_v38 }
  0x9d   : > { %v457_v44 = vsub.f32 %v454_v43, %v456_v42 }
  0x9f   : > { %460 = vst.msk [vmem:[%s363_s9] sm:$0xff] %vm459_vm1, %v457_v44 }
  0xa0   : > { %v410_v50 = vpop.f32.mrf.mxu0 }
  0xa1   : > { %v495_v46 = vpop.f32.mrf.mxu2  ;;  %v453_v52 = vmul.f32 2.0, %v410_v50 }
  0xa2   : > { %v518_v48 = vpack.c.bf16 %v495_v46, %v495_v46  ;;  %v513_v49 = vpop.f32.mrf.mxu3 }
  0xa3   : > { %v514_v51 = vadd.f32 %v777_v45, %v513_v49  ;;  %v455_v53 = vsub.f32 %v453_v52, %v420_v47 }
  0xa4   : > { %521 = vst.msk [vmem:[%s373_s15] sm:$0xf] %vm520_vm2, %v518_v48 }
  0xa5   : > { %523 = vst.msk [vmem:[%s383_s18] sm:$0xff] %vm392_vm0, %v514_v51  ;;  %v458_v54 = vsub.f32 %v455_v53, %v456_v42 }
  0xa7   : > { %461 = vst.msk [vmem:[%s363_s9 + $0x8] sm:$0xff] %vm459_vm1, %v458_v54 }
  0xa9   : > { %v497_v55 = vpop.f32.mrf.mxu2 }
  0xaa   : > { %v519_v56 = vpack.c.bf16 %v497_v55, %v497_v55  ;;  %v515_v57 = vpop.f32.mrf.mxu3 }
  0xab   : > { %v516_v58 = vadd.f32 %v777_v45, %v515_v57 }
  0xac   : > { %522 = vst.msk [vmem:[%s373_s15 + $0x4] sm:$0xf] %vm520_vm2, %v519_v56 }
  0xad   : > { %524 = vst.msk [vmem:[%s383_s18 + $0x8] sm:$0xff] %vm392_vm0, %v516_v58 }
  0xae PF: > { %s18_s26 = sadd.s32 1, %s800_s26   ;;  %s969_s24 = smov %s796_s25 }
  0xaf   : > { %p15_p5 = scmp.ge.s32.totalorder %s18_s26, 4   ;;  %s970_s25 = smov %s972_s27 }
  0xb1   :  { %17 = sbr.rel (!%p15_p5) target bundleno = 2 (0x2), region = 97 }

// kernel: dgcnn_feature_space.12
= control target key start
LH: loop header
LB: loop body
LE: loop exit
PB: predicated region body
PF: predicated region fallthrough
CT: control target
= control target key end

     0   :  { %s847_s24 = smov 0   ;;  %s849_s25 = smov 0   ;;  %s959_s0 = inlined_call_operand.vmem [shape: f32[2,16,64], index: 0, kind: input, shape index: {}, may-alias: {0,1}]   ;;  %s960_s1 = inlined_call_operand.vmem [shape: f32[2,16,64], index: 1, kind: input, shape index: {}, may-alias: {0,1}]   ;;  %s961_s2 = inlined_call_operand.vmem [shape: f32[64,128], index: 2, kind: input, shape index: {}]   ;;  %s962_s3 = inlined_call_operand.vmem [shape: f32[64,128], index: 3, kind: input, shape index: {}]   ;;  %s963_s4 = inlined_call_operand.vmem [shape: f32[1,128], index: 4, kind: input, shape index: {}]   ;;  %s964_s5 = inlined_call_operand.vmem [shape: f32[2,16,16], index: 5, kind: output, shape index: {0}]   ;;  %s965_s6 = inlined_call_operand.vmem [shape: bf16[2,16,128], index: 6, kind: output, shape index: {1}]   ;;  %s966_s7 = inlined_call_operand.vmem [shape: f32[2,16,128], index: 7, kind: output, shape index: {2}]  }
   0x1   :  { %s851_s26 = smov 0  }
   0x2 LB: > { %s30_s27 = sadd.s32 1, %s800_s25  ;;  %p727_p0 = scmp.ge.s32.totalorder %s804_s26, 1  ;;  %s804_s26 = sphi %s851_s26, %s18_s26   ;;  %s800_s25 = sphi %s849_s25, %s968_s25   ;;  %s796_s24 = sphi %s847_s24, %s967_s24  }
   0x3   : > { %p32_p1 = scmp.ge.s32.totalorder %s30_s27, 2  ;;  %p277_p2 = scmp.lt.s32.totalorder %s804_s26, 3 }
   0x5   : > { %s970_s27 = smov (%p32_p1, %s30_s27), 0  ;;  %p278_p3 = pnand %p727_p0, %p277_p2 }
   0x6   : > { %p341_p4 = scmp.lt.s32.totalorder (!%p278_p3), %s796_s24, 1 }
   0x7   : > { %281 = sbr.rel (%p278_p3) target bundleno = 174 (0xae), region = 40 }
   0xc   : > { %v468_v0 = vld [vmem:[%s961_s2 + $0x30] sm:$0xff]  ;;  %v469_v1 = vld [vmem:[%s961_s2 + $0x38] sm:$0xff]  ;;  %v466_v5 = vld [vmem:[%s961_s2 + $0x20] sm:$0xff]  ;;  %s972_s24 = smov (!%p341_p4, %s796_s24), 1  ;;  %vm392_vm0 = vcmask 523264   ;;  %v806_v37 = vmov 1.0  }
   0xd   : > { %v480_v2 = vld [vmem:[%s962_s3 + $0x30] sm:$0xff]  ;;  %v473_v3 = vpack.c.bf16 %v469_v1, %v468_v0  ;;  %v481_v4 = vld [vmem:[%s962_s3 + $0x38] sm:$0xff]  ;;  %v467_v6 = vld [vmem:[%s961_s2 + $0x28] sm:$0xff]  ;;  %s892_s21 = sshll.u32 %s972_s24, 4  ;;  %vm459_vm1 = vcmask 130048   ;;  %s749_s15 = sshll.u32 %s972_s24, 3 }
   0xe   : > { %v485_v7 = vpack.c.bf16 %v481_v4, %v480_v2  ;;  %v478_v8 = vld [vmem:[%s962_s3 + $0x20] sm:$0xff]  ;;  %v479_v9 = vld [vmem:[%s962_s3 + $0x28] sm:$0xff]  ;;  %v472_v10 = vpack.c.bf16 %v467_v6, %v466_v5  ;;  %v464_v12 = vld [vmem:[%s961_s2 + $0x10] sm:$0xff]  ;;  %s354_s9 = scalar_lea.vmem %s960_s1, %s892_s21  ;;  %s348_s16 = scalar_lea.vmem %s959_s0, %s892_s21 }
   0xf   : > { %490 = vmatpush.bf16.msra.mxu2 %v473_v3  ;;  %v484_v11 = vpack.c.bf16 %v479_v9, %v478_v8  ;;  %v465_v13 = vld [vmem:[%s961_s2 + $0x18] sm:$0xff]  ;;  %v476_v14 = vld [vmem:[%s962_s3 + $0x10] sm:$0xff]  ;;  %v388_v16 = vld [vmem:[%s354_s9] sm:$0xff]  ;;  %s383_s14 = scalar_lea.vmem %s966_s7, %s892_s21  ;;  %s373_s18 = scalar_lea.vmem %s965_s6, %s749_s15 }
  0x10   : > { %508 = vmatpush.bf16.msra.mxu3 %v485_v7  ;;  %v477_v15 = vld [vmem:[%s962_s3 + $0x18] sm:$0xff]  ;;  %v389_v17 = vld [vmem:[%s354_s9 + $0x8] sm:$0xff]  ;;  %v386_v18 = vld [vmem:[%s348_s16] sm:$0xff]  ;;  %v471_v20 = vpack.c.bf16 %v465_v13, %v464_v12  ;;  %v421_v27 = vmul.f32 %v388_v16, %v388_v16  ;;  %s363_s9 = scalar_lea.vmem %s964_s5, %s892_s21 }
  0x11   : > { %v391_v19 = vpack.c.bf16 %v389_v17, %v388_v16  ;;  %v422_v21 = vmul.f32 %v389_v17, %v389_v17  ;;  %v413_v22 = vmul.f32 %v386_v18, %v386_v18  ;;  %v483_v23 = vpack.c.bf16 %v477_v15, %v476_v14  ;;  %v462_v24 = vld [vmem:[%s961_s2] sm:$0xff]  ;;  %v463_v25 = vld [vmem:[%s961_s2 + $0x8] sm:$0xff] }
  0x12   : > { %v474_v28 = vld [vmem:[%s962_s3] sm:$0xff]  ;;  %v475_v29 = vld [vmem:[%s962_s3 + $0x8] sm:$0xff]  ;;  %v470_v32 = vpack.c.bf16 %v463_v25, %v462_v24 }
  0x13   : > { %491 = vmatpush.bf16.msra.mxu2 %v472_v10  ;;  %v397_v26 = vsel %vm392_vm0, %v391_v19, 0  ;;  %739 = vmatpush.xpose.msk.msra.mxu1 %vm392_vm0, %v422_v21  ;;  %v415_v30 = vsel %vm392_vm0, %v413_v22, 0.0  ;;  %v387_v31 = vld [vmem:[%s348_s16 + $0x8] sm:$0xff]  ;;  %v482_v34 = vpack.c.bf16 %v475_v29, %v474_v28  ;;  %v781_v45 = vld [vmem:[%s963_s4] ss:$0 sm:$0xff] }
  0x14   : > { %509 = vmatpush.bf16.msra.mxu3 %v484_v11  ;;  %406 = vmatpush.bf16.xpose.msra.mxu0 %v397_v26  ;;  %v414_v33 = vmul.f32 %v387_v31, %v387_v31  ;;  %v390_v35 = vpack.c.bf16 %v387_v31, %v386_v18 }
  0x15   : > { %416 = vadd.xlane.f32.xlu0 %v415_v30 }
  0x16   : > { %v418_v36 = vsel %vm392_vm0, %v414_v33, 0.0 }
  0x17   : > { %492 = vmatpush.bf16.msra.mxu2 %v471_v20  ;;  %740 = vmatpush.xpose.msk.msra.mxu1 %vm392_vm0, %v421_v27 }
  0x18   : > { %510 = vmatpush.bf16.msra.mxu3 %v483_v23 }
  0x1a   : > { %741 = vmatmul.msk.f32.vlgmr.msra.gmra.mxu1 %vm392_vm0, %v806_v37 }
  0x1b   : > { %493 = vmatpush.bf16.msra.mxu2 %v470_v32  ;;  %738 = vmatmul.msk.bf16.vlgmr.msra.gmra.mxu0 %vm392_vm0, %v390_v35 }
  0x1c   : > { %511 = vmatpush.bf16.msra.mxu3 %v482_v34 }
  0x1d   : > { %419 = vadd.xlane.f32.xlu0 %v418_v36 }
  0x1e   : > { %742 = vmatmul.msk.bf16.vlgmr.msra.gmra.mxu2 %vm392_vm0, %v390_v35 }
  0x1f   : > { %743 = vmatmul.msk.bf16.vlgmr.msra.gmra.mxu3 %vm392_vm0, %v390_v35 }
  0x88   : > { %v417_v38 = vpop.xlane.xlu0 %416 }
  0x90   : > { %v420_v47 = vpop.xlane.xlu0 %419 }
  0x97   : > { %v449_v39 = vpop.f32.mrf.mxu1 }
  0x98   : > { %v408_v40 = vpop.f32.mrf.mxu0  ;;  %v456_v42 = vperm.slane %v449_v39, 0 }
  0x99   : > { %v452_v41 = vmul.f32 2.0, %v408_v40 }
  0x9b   : > { %v454_v43 = vsub.f32 %v452_v41, %v417_v38 }
  0x9d   : > { %v457_v44 = vsub.f32 %v454_v43, %v456_v42 }
  0x9f   : > { %460 = vst.msk [vmem:[%s363_s9] sm:$0xff] %vm459_vm1, %v457_v44 }
  0xa0   : > { %v410_v49 = vpop.f32.mrf.mxu0 }
  0xa1   : > { %v495_v46 = vpop.f32.mrf.mxu2  ;;  %v453_v51 = vmul.f32 2.0, %v410_v49 }
  0xa2   : > { %v513_v48 = vpop.f32.mrf.mxu3 }
  0xa3   : > { %v514_v50 = vadd.f32 %v781_v45, %v513_v48  ;;  %v455_v52 = vsub.f32 %v453_v51, %v420_v47 }
  0xa5   : > { %522 = vst [vmem:[%s383_s14] sm:$0xff] %v514_v50  ;;  %v458_v53 = vsub.f32 %v455_v52, %v456_v42 }
  0xa7   : > { %461 = vst.msk [vmem:[%s363_s9 + $0x8] sm:$0xff] %vm459_vm1, %v458_v53 }
  0xa9   : > { %v497_v54 = vpop.f32.mrf.mxu2 }
  0xaa   : > { %v754_v55 = vpack.c.bf16 %v497_v54, %v495_v46  ;;  %v515_v56 = vpop.f32.mrf.mxu3 }
  0xab   : > { %v516_v57 = vadd.f32 %v781_v45, %v515_v56 }
  0xac   : > { %755 = vst [vmem:[%s373_s18] sm:$0xff] %v754_v55  }
  0xad   : > { %523 = vst [vmem:[%s383_s14 + $0x8] sm:$0xff] %v516_v57 }
  0xae PF: > { %s18_s26 = sadd.s32 1, %s804_s26   ;;  %s967_s24 = smov %s800_s25 }
  0xaf   : > { %p15_p5 = scmp.ge.s32.totalorder %s18_s26, 4   ;;  %s968_s25 = smov %s970_s27 }
  0xb1   :  { %17 = sbr.rel (!%p15_p5) target bundleno = 2 (0x2), region = 97 }

// kernel: dgcnn_feature_space.13
= control target key start
LH: loop header
LB: loop body
LE: loop exit
PB: predicated region body
PF: predicated region fallthrough
CT: control target
= control target key end

     0   :  { %s500_s9 = smov 0   ;;  %s502_s10 = smov 0   ;;  %s540_s0 = inlined_call_operand.vmem [shape: bf16[2,8,16,128], index: 0, kind: input, shape index: {}]   ;;  %s541_s1 = inlined_call_operand.vmem [shape: f32[2,16,128], index: 1, kind: input, shape index: {}]   ;;  %s542_s2 = inlined_call_operand.vmem [shape: f32[2,16,128], index: 2, kind: output, shape index: {}]  }
   0x1   :  { %s504_s11 = smov 0  }
   0x2 LB: > { %s24_s12 = sadd.s32 1, %s479_s10  ;;  %p386_p0 = scmp.ge.s32.totalorder %s483_s11, 1  ;;  %s483_s11 = sphi %s504_s11, %s12_s11   ;;  %s479_s10 = sphi %s502_s10, %s544_s10   ;;  %s475_s9 = sphi %s500_s9, %s543_s9  }
   0x3   : > { %p26_p1 = scmp.ge.s32.totalorder %s24_s12, 2  ;;  %p150_p2 = scmp.lt.s32.totalorder %s483_s11, 3 }
   0x5   : > { %s546_s12 = smov (%p26_p1, %s24_s12), 0  ;;  %p151_p3 = pnand %p386_p0, %p150_p2 }
   0x6   : > { %p190_p4 = scmp.lt.s32.totalorder (!%p151_p3), %s475_s9, 1 }
   0x7   : > { %154 = sbr.rel (%p151_p3) target bundleno = 35 (0x23), region = 28 }
   0xc   : > { %s548_s9 = smov (!%p190_p4, %s475_s9), 1 }
   0xd   : > { %s395_s13 = sshll.u32 %s548_s9, 6  ;;  %s396_s17 = sshll.u32 %s548_s9, 4 }
   0xe   : > { %s197_s16 = scalar_lea.vmem %s540_s0, %s395_s13  ;;  %s207_s20 = scalar_lea.vmem %s541_s1, %s396_s17 }
   0xf   : > { %v399_v0 = vld [vmem:[%s197_s16] sm:$0xff]   ;;  %v430_v1 = vld [vmem:[%s197_s16 + $0x8] sm:$0xff]   ;;  %v431_v2 = vld [vmem:[%s197_s16 + $0x10] sm:$0xff]   ;;  %s217_s23 = scalar_lea.vmem %s542_s2, %s396_s17 }
  0x10   : > { %v400_v3 = vunpack.c.l.bf16 %v399_v0  ;;  %v401_v4 = vunpack.c.h.bf16 %v399_v0  ;;  %v404_v5 = vunpack.c.l.bf16 %v430_v1  ;;  %v405_v6 = vunpack.c.h.bf16 %v430_v1  ;;  %v432_v7 = vld [vmem:[%s197_s16 + $0x18] sm:$0xff]   ;;  %v433_v8 = vld [vmem:[%s197_s16 + $0x20] sm:$0xff]   ;;  %v434_v9 = vld [vmem:[%s197_s16 + $0x28] sm:$0xff]  }
  0x11   : > { %v408_v10 = vunpack.c.l.bf16 %v431_v2  ;;  %v409_v11 = vunpack.c.h.bf16 %v431_v2  ;;  %v412_v12 = vunpack.c.l.bf16 %v432_v7  ;;  %v413_v13 = vunpack.c.h.bf16 %v432_v7  ;;  %v435_v14 = vld [vmem:[%s197_s16 + $0x30] sm:$0xff]   ;;  %v436_v15 = vld [vmem:[%s197_s16 + $0x38] sm:$0xff]   ;;  %v265_v36 = vld [vmem:[%s207_s20] sm:$0xff] }
  0x12   : > { %v416_v16 = vunpack.c.l.bf16 %v433_v8  ;;  %v417_v17 = vunpack.c.h.bf16 %v433_v8  ;;  %v420_v18 = vunpack.c.l.bf16 %v434_v9  ;;  %v421_v19 = vunpack.c.h.bf16 %v434_v9  ;;  %v266_v37 = vld [vmem:[%s207_s20 + $0x8] sm:$0xff] }
  0x13   : > { %v424_v20 = vunpack.c.l.bf16 %v435_v14  ;;  %v425_v21 = vunpack.c.h.bf16 %v435_v14  ;;  %v428_v22 = vunpack.c.l.bf16 %v436_v15  ;;  %v429_v23 = vunpack.c.h.bf16 %v436_v15 }
  0x14   : > { %v251_v24 = vmax.f32 %v400_v3, %v408_v10  ;;  %v252_v25 = vmax.f32 %v404_v5, %v412_v12  ;;  %v258_v26 = vmax.f32 %v401_v4, %v409_v11  ;;  %v259_v27 = vmax.f32 %v405_v6, %v413_v13 }
  0x16   : > { %v253_v28 = vmax.f32 %v251_v24, %v416_v16  ;;  %v254_v29 = vmax.f32 %v252_v25, %v420_v18  ;;  %v260_v30 = vmax.f32 %v258_v26, %v417_v17  ;;  %v261_v31 = vmax.f32 %v259_v27, %v421_v19 }
  0x18   : > { %v255_v32 = vmax.f32 %v253_v28, %v424_v20  ;;  %v256_v33 = vmax.f32 %v254_v29, %v428_v22  ;;  %v262_v34 = vmax.f32 %v260_v30, %v425_v21  ;;  %v263_v35 = vmax.f32 %v261_v31, %v429_v23 }
  0x1a   : > { %v257_v38 = vmax.f32 %v255_v32, %v256_v33  ;;  %v264_v39 = vmax.f32 %v262_v34, %v263_v35 }
  0x1c   : > { %v267_v40 = vadd.f32 %v265_v36, %v257_v38  ;;  %v268_v41 = vadd.f32 %v266_v37, %v264_v39 }
  0x1e   : > { %vm269_vm0 = vcmp.gt.f32.partialorder %v267_v40, 0.0  ;;  %v271_v42 = vmul.f32 0.2, %v267_v40  ;;  %vm270_vm1 = vcmp.gt.f32.partialorder %v268_v41, 0.0  ;;  %v272_v43 = vmul.f32 0.2, %v268_v41 }
  0x20   : > { %v273_v44 = vsel %vm269_vm0, %v267_v40, %v271_v42  ;;  %v274_v45 = vsel %vm270_vm1, %v268_v41, %v272_v43 }
  0x21   : > { %275 = vst [vmem:[%s217_s23] sm:$0xff] %v273_v44 }
  0x22   : > { %276 = vst [vmem:[%s217_s23 + $0x8] sm:$0xff] %v274_v45 }
  0x23 PF: > { %s12_s11 = sadd.s32 1, %s483_s11   ;;  %s543_s9 = smov %s479_s10 }
  0x24   : > { %p9_p5 = scmp.ge.s32.totalorder %s12_s11, 4   ;;  %s544_s10 = smov %s546_s12 }
  0x26   :  { %11 = sbr.rel (!%p9_p5) target bundleno = 2 (0x2), region = 61 }

// kernel: dgcnn_feature_space.14
= control target key start
LH: loop header
LB: loop body
LE: loop exit
PB: predicated region body
PF: predicated region fallthrough
CT: control target
= control target key end

     0   :  { %s937_s24 = smov 0   ;;  %s939_s25 = smov 0   ;;  %s1191_s0 = inlined_call_operand.vmem [shape: f32[2,16,128], index: 0, kind: input, shape index: {}, may-alias: {0,1}]   ;;  %s1192_s1 = inlined_call_operand.vmem [shape: f32[2,16,128], index: 1, kind: input, shape index: {}, may-alias: {0,1}]   ;;  %s1193_s2 = inlined_call_operand.vmem [shape: f32[128,256], index: 2, kind: input, shape index: {}]   ;;  %s1194_s3 = inlined_call_operand.vmem [shape: f32[128,256], index: 3, kind: input, shape index: {}]   ;;  %s1195_s4 = inlined_call_operand.vmem [shape: f32[1,256], index: 4, kind: input, shape index: {}]   ;;  %s1196_s5 = inlined_call_operand.vmem [shape: f32[2,16,16], index: 5, kind: output, shape index: {0}]   ;;  %s1197_s6 = inlined_call_operand.vmem [shape: bf16[2,16,256], index: 6, kind: output, shape index: {1}]   ;;  %s1198_s7 = inlined_call_operand.vmem [shape: f32[2,16,256], index: 7, kind: output, shape index: {2}]  }
   0x1   :  { %s941_s26 = smov 0  }
   0x2 LB: > { %s30_s27 = sadd.s32 1, %s890_s25  ;;  %p829_p0 = scmp.ge.s32.totalorder %s894_s26, 1  ;;  %s894_s26 = sphi %s941_s26, %s18_s26   ;;  %s890_s25 = sphi %s939_s25, %s1200_s25   ;;  %s886_s24 = sphi %s937_s24, %s1199_s24  }
   0x3   : > { %p32_p1 = scmp.ge.s32.totalorder %s30_s27, 2  ;;  %p277_p2 = scmp.lt.s32.totalorder %s894_s26, 3 }
   0x5   : > { %s1202_s27 = smov (%p32_p1, %s30_s27), 0  ;;  %p278_p3 = pnand %p829_p0, %p277_p2 }
   0x6   : > { %p343_p4 = scmp.lt.s32.totalorder (!%p278_p3), %s886_s24, 1 }
   0x7   : > { %281 = sbr.rel (%p278_p3) target bundleno = 197 (0xc5), region = 40 }
   0xc   : > { %v476_v0 = vld [vmem:[%s1193_s2 + $0xe0] sm:$0xff]  ;;  %v478_v1 = vld [vmem:[%s1193_s2 + $0xf0] sm:$0xff]  ;;  %v477_v2 = vld [vmem:[%s1193_s2 + $0xe8] sm:$0xff]  ;;  %s1204_s24 = smov (!%p343_p4, %s886_s24), 1  ;;  %v896_v63 = vmov 1.0   ;;  %vm445_vm0 = vcmask 130048  }
   0xd   : > { %v494_v3 = vpack.c.bf16 %v478_v1, %v476_v0  ;;  %v479_v4 = vld [vmem:[%s1193_s2 + $0xf8] sm:$0xff]  ;;  %v472_v5 = vld [vmem:[%s1193_s2 + $0xc0] sm:$0xff]  ;;  %v474_v6 = vld [vmem:[%s1193_s2 + $0xd0] sm:$0xff]  ;;  %s985_s23 = sshll.u32 %s1204_s24, 4  ;;  %s846_s19 = sshll.u32 %s1204_s24, 5 }
   0xe   : > { %v495_v7 = vpack.c.bf16 %v479_v4, %v477_v2  ;;  %v473_v8 = vld [vmem:[%s1193_s2 + $0xc8] sm:$0xff]  ;;  %v475_v9 = vld [vmem:[%s1193_s2 + $0xd8] sm:$0xff]  ;;  %v492_v10 = vpack.c.bf16 %v474_v6, %v472_v5  ;;  %v524_v11 = vld [vmem:[%s1194_s3 + $0xe0] sm:$0xff]  ;;  %s350_s13 = scalar_lea.vmem %s1191_s0, %s985_s23  ;;  %s356_s16 = scalar_lea.vmem %s1192_s1, %s985_s23 }
   0xf   : > { %544 = vmatpush.bf16.msra.mxu2 %v494_v3  ;;  %v493_v12 = vpack.c.bf16 %v475_v9, %v473_v8  ;;  %v526_v13 = vld [vmem:[%s1194_s3 + $0xf0] sm:$0xff]  ;;  %v468_v14 = vld [vmem:[%s1193_s2 + $0xa0] sm:$0xff]  ;;  %v469_v16 = vld [vmem:[%s1193_s2 + $0xa8] sm:$0xff]  ;;  %s376_s22 = scalar_lea.vmem %s1197_s6, %s985_s23 }
  0x10   : > { %558 = vmatpush.bf16.msra.mxu3 %v495_v7  ;;  %v470_v15 = vld [vmem:[%s1193_s2 + $0xb0] sm:$0xff]  ;;  %v471_v17 = vld [vmem:[%s1193_s2 + $0xb8] sm:$0xff]  ;;  %v390_v18 = vld [vmem:[%s350_s13] sm:$0xff]  ;;  %v542_v21 = vpack.c.bf16 %v526_v13, %v524_v11 }
  0x11   : > { %v392_v19 = vld [vmem:[%s356_s16] sm:$0xff]  ;;  %v393_v20 = vld [vmem:[%s356_s16 + $0x8] sm:$0xff]  ;;  %v490_v22 = vpack.c.bf16 %v470_v15, %v468_v14  ;;  %v522_v24 = vld [vmem:[%s1194_s3 + $0xd0] sm:$0xff]  ;;  %v410_v25 = vmul.f32 %v390_v18, %v390_v18  ;;  %v491_v28 = vpack.c.bf16 %v471_v17, %v469_v16  ;;  %s365_s16 = scalar_lea.vmem %s1196_s5, %s985_s23 }
  0x12   : > { %v520_v23 = vld [vmem:[%s1194_s3 + $0xc0] sm:$0xff]  ;;  %v395_v26 = vpack.c.bf16 %v393_v20, %v392_v19  ;;  %v417_v27 = vmul.f32 %v393_v20, %v393_v20  ;;  %v525_v29 = vld [vmem:[%s1194_s3 + $0xe8] sm:$0xff]  ;;  %v527_v30 = vld [vmem:[%s1194_s3 + $0xf8] sm:$0xff]  ;;  %v416_v36 = vmul.f32 %v392_v19, %v392_v19 }
  0x13   : > { %545 = vmatpush.bf16.msra.mxu2 %v492_v10  ;;  %v464_v31 = vld [vmem:[%s1193_s2 + $0x80] sm:$0xff]  ;;  %v466_v32 = vld [vmem:[%s1193_s2 + $0x90] sm:$0xff]  ;;  %v465_v33 = vld [vmem:[%s1193_s2 + $0x88] sm:$0xff]  ;;  %412 = vadd.xlane.f32.xlu0 %v410_v25  ;;  %v540_v37 = vpack.c.bf16 %v522_v24, %v520_v23  ;;  %v543_v38 = vpack.c.bf16 %v527_v30, %v525_v29 }
  0x14   : > { %559 = vmatpush.bf16.msra.mxu3 %v493_v12  ;;  %v467_v34 = vld [vmem:[%s1193_s2 + $0x98] sm:$0xff]  ;;  %v391_v35 = vld [vmem:[%s350_s13 + $0x8] sm:$0xff]  ;;  %403 = vmatpush.bf16.xpose.msra.mxu0 %v395_v26  ;;  %v516_v39 = vld [vmem:[%s1194_s3 + $0xa0] sm:$0xff]  ;;  %v488_v41 = vpack.c.bf16 %v466_v32, %v464_v31  ;;  %s387_s13 = scalar_lea.vmem %s1198_s7, %s846_s19 }
  0x15   : > { %432 = vmatpush.xpose.msra.mxu1 %v417_v27  ;;  %v518_v40 = vld [vmem:[%s1194_s3 + $0xb0] sm:$0xff]  ;;  %v489_v42 = vpack.c.bf16 %v467_v34, %v465_v33  ;;  %v521_v43 = vld [vmem:[%s1194_s3 + $0xc8] sm:$0xff]  ;;  %v523_v44 = vld [vmem:[%s1194_s3 + $0xd8] sm:$0xff]  ;;  %v1058_v49 = vpack.c.bf16 %v391_v35, %v390_v18  ;;  %v411_v50 = vmul.f32 %v391_v35, %v391_v35 }
  0x16   : > { %v460_v45 = vld [vmem:[%s1193_s2 + $0x60] sm:$0xff]  ;;  %v462_v46 = vld [vmem:[%s1193_s2 + $0x70] sm:$0xff]  ;;  %v461_v47 = vld [vmem:[%s1193_s2 + $0x68] sm:$0xff]  ;;  %v538_v51 = vpack.c.bf16 %v518_v40, %v516_v39  ;;  %v541_v52 = vpack.c.bf16 %v523_v44, %v521_v43 }
  0x17   : > { %546 = vmatpush.bf16.msra.mxu2 %v490_v22  ;;  %v463_v48 = vld [vmem:[%s1193_s2 + $0x78] sm:$0xff]  ;;  %v512_v53 = vld [vmem:[%s1194_s3 + $0x80] sm:$0xff]  ;;  %v514_v54 = vld [vmem:[%s1194_s3 + $0x90] sm:$0xff]  ;;  %v486_v55 = vpack.c.bf16 %v462_v46, %v460_v45 }
  0x18   : > { %560 = vmatpush.bf16.msra.mxu3 %v491_v28  ;;  %v487_v56 = vpack.c.bf16 %v463_v48, %v461_v47  ;;  %v517_v57 = vld [vmem:[%s1194_s3 + $0xa8] sm:$0xff]  ;;  %v519_v58 = vld [vmem:[%s1194_s3 + $0xb8] sm:$0xff]  ;;  %v456_v59 = vld [vmem:[%s1193_s2 + $0x40] sm:$0xff]  ;;  %v536_v0 = vpack.c.bf16 %v514_v54, %v512_v53 }
  0x19   : > { %433 = vmatpush.xpose.msra.mxu1 %v416_v36  ;;  %v458_v60 = vld [vmem:[%s1193_s2 + $0x50] sm:$0xff]  ;;  %v457_v61 = vld [vmem:[%s1193_s2 + $0x48] sm:$0xff]  ;;  %v459_v62 = vld [vmem:[%s1193_s2 + $0x58] sm:$0xff]  ;;  %v539_v1 = vpack.c.bf16 %v519_v58, %v517_v57 }
  0x1a   : > { %v508_v2 = vld [vmem:[%s1194_s3 + $0x60] sm:$0xff]  ;;  %v510_v3 = vld [vmem:[%s1194_s3 + $0x70] sm:$0xff]  ;;  %v484_v4 = vpack.c.bf16 %v458_v60, %v456_v59  ;;  %v485_v5 = vpack.c.bf16 %v459_v62, %v457_v61  ;;  %v513_v6 = vld [vmem:[%s1194_s3 + $0x88] sm:$0xff] }
  0x1b   : > { %547 = vmatpush.bf16.msra.mxu2 %v488_v41  ;;  %404 = vmatmul.bf16.vlgmr.msra.gmra.mxu0 %v1058_v49  ;;  %v515_v7 = vld [vmem:[%s1194_s3 + $0x98] sm:$0xff]  ;;  %v452_v8 = vld [vmem:[%s1193_s2 + $0x20] sm:$0xff]  ;;  %v454_v9 = vld [vmem:[%s1193_s2 + $0x30] sm:$0xff]  ;;  %v534_v12 = vpack.c.bf16 %v510_v3, %v508_v2 }
  0x1c   : > { %578 = vmatpush.bf16.msrb.mxu0 %v542_v21  ;;  %561 = vmatpush.bf16.msra.mxu3 %v489_v42  ;;  %v453_v10 = vld [vmem:[%s1193_s2 + $0x28] sm:$0xff]  ;;  %v455_v11 = vld [vmem:[%s1193_s2 + $0x38] sm:$0xff]  ;;  %v537_v13 = vpack.c.bf16 %v515_v7, %v513_v6  ;;  %v504_v14 = vld [vmem:[%s1194_s3 + $0x40] sm:$0xff]  ;;  %v482_v16 = vpack.c.bf16 %v454_v9, %v452_v8 }
  0x1d   : > { %592 = vmatpush.bf16.msrb.mxu1 %v543_v38  ;;  %414 = vadd.xlane.f32.xlu0 %v411_v50  ;;  %v506_v15 = vld [vmem:[%s1194_s3 + $0x50] sm:$0xff]  ;;  %v483_v17 = vpack.c.bf16 %v455_v11, %v453_v10  ;;  %v509_v18 = vld [vmem:[%s1194_s3 + $0x68] sm:$0xff]  ;;  %v511_v19 = vld [vmem:[%s1194_s3 + $0x78] sm:$0xff] }
  0x1e   : > { %434 = vmatmul.f32.vlgmr.msra.gmra.mxu1 %v896_v63  ;;  %v448_v20 = vld [vmem:[%s1193_s2] sm:$0xff]  ;;  %v450_v21 = vld [vmem:[%s1193_s2 + $0x10] sm:$0xff]  ;;  %v449_v22 = vld [vmem:[%s1193_s2 + $0x8] sm:$0xff]  ;;  %v532_v24 = vpack.c.bf16 %v506_v15, %v504_v14  ;;  %v535_v25 = vpack.c.bf16 %v511_v19, %v509_v18 }
  0x1f   : > { %548 = vmatpush.bf16.msra.mxu2 %v486_v55  ;;  %v451_v23 = vld [vmem:[%s1193_s2 + $0x18] sm:$0xff]  ;;  %v480_v26 = vpack.c.bf16 %v450_v21, %v448_v20  ;;  %v500_v28 = vld [vmem:[%s1194_s3 + $0x20] sm:$0xff]  ;;  %v502_v29 = vld [vmem:[%s1194_s3 + $0x30] sm:$0xff] }
  0x20   : > { %579 = vmatpush.bf16.msrb.mxu0 %v540_v37  ;;  %562 = vmatpush.bf16.msra.mxu3 %v487_v56  ;;  %v481_v27 = vpack.c.bf16 %v451_v23, %v449_v22  ;;  %v505_v30 = vld [vmem:[%s1194_s3 + $0x48] sm:$0xff]  ;;  %v507_v31 = vld [vmem:[%s1194_s3 + $0x58] sm:$0xff]  ;;  %v530_v32 = vpack.c.bf16 %v502_v29, %v500_v28  ;;  %v496_v34 = vld [vmem:[%s1194_s3] sm:$0xff] }
  0x21   : > { %593 = vmatpush.bf16.msrb.mxu1 %v541_v52  ;;  %v533_v33 = vpack.c.bf16 %v507_v31, %v505_v30  ;;  %v498_v35 = vld [vmem:[%s1194_s3 + $0x10] sm:$0xff]  ;;  %v501_v36 = vld [vmem:[%s1194_s3 + $0x28] sm:$0xff]  ;;  %v503_v37 = vld [vmem:[%s1194_s3 + $0x38] sm:$0xff] }
  0x22   : > { %v528_v38 = vpack.c.bf16 %v498_v35, %v496_v34  ;;  %v531_v39 = vpack.c.bf16 %v503_v37, %v501_v36  ;;  %v497_v40 = vld [vmem:[%s1194_s3 + $0x8] sm:$0xff]  ;;  %v499_v41 = vld [vmem:[%s1194_s3 + $0x18] sm:$0xff]  ;;  %v572_v55 = vld [vmem:[%s1195_s4] sm:$0x3] }
  0x23   : > { %549 = vmatpush.bf16.msra.mxu2 %v484_v4  ;;  %v529_v42 = vpack.c.bf16 %v499_v41, %v497_v40  ;;  %v574_v56 = vperm.slane %v572_v55, 0  ;;  %v575_v62 = vperm.slane %v572_v55, 1 }
  0x24   : > { %580 = vmatpush.bf16.msrb.mxu0 %v538_v51  ;;  %563 = vmatpush.bf16.msra.mxu3 %v485_v5 }
  0x25   : > { %594 = vmatpush.bf16.msrb.mxu1 %v539_v1 }
  0x27   : > { %550 = vmatpush.bf16.msra.mxu2 %v482_v16 }
  0x28   : > { %581 = vmatpush.bf16.msrb.mxu0 %v536_v0  ;;  %564 = vmatpush.bf16.msra.mxu3 %v483_v17 }
  0x29   : > { %595 = vmatpush.bf16.msrb.mxu1 %v537_v13 }
  0x2b   : > { %551 = vmatpush.bf16.msra.mxu2 %v480_v26 }
  0x2c   : > { %582 = vmatpush.bf16.msrb.mxu0 %v534_v12  ;;  %565 = vmatpush.bf16.msra.mxu3 %v481_v27 }
  0x2d   : > { %596 = vmatpush.bf16.msrb.mxu1 %v535_v25 }
  0x2e   : > { %552 = vmatmul.bf16.vlgmr.msra.gmra.mxu2 %v1058_v49 }
  0x2f   : > { %566 = vmatmul.bf16.vlgmr.msra.gmra.mxu3 %v1058_v49 }
  0x30   : > { %583 = vmatpush.bf16.msrb.mxu0 %v532_v24 }
  0x31   : > { %597 = vmatpush.bf16.msrb.mxu1 %v533_v33 }
  0x34   : > { %584 = vmatpush.bf16.msrb.mxu0 %v530_v32 }
  0x35   : > { %598 = vmatpush.bf16.msrb.mxu1 %v531_v39 }
  0x38   : > { %585 = vmatpush.bf16.msrb.mxu0 %v528_v38 }
  0x39   : > { %599 = vmatpush.bf16.msrb.mxu1 %v529_v42 }
  0x3b   : > { %586 = vmatmul.bf16.vlgmr.msrb.gmra.mxu0 %v1058_v49 }
  0x3c   : > { %600 = vmatmul.bf16.vlgmr.msrb.gmra.mxu1 %v1058_v49 }
  0x86   : > { %v413_v43 = vpop.xlane.xlu0 %412 }
  0x90   : > { %v415_v52 = vpop.xlane.xlu0 %414 }
  0x98   : > { %v405_v44 = vpop.f32.mrf.mxu0 }
  0x99   : > { %v438_v46 = vmul.f32 2.0, %v405_v44 }
  0x9b   : > { %v435_v45 = vpop.f32.mrf.mxu1  ;;  %v440_v48 = vsub.f32 %v438_v46, %v413_v43 }
  0x9c   : > { %v442_v47 = vperm.slane %v435_v45, 0 }
  0x9e   : > { %v443_v50 = vsub.f32 %v440_v48, %v442_v47 }
  0xa0   : > { %446 = vst.msk [vmem:[%s365_s16] sm:$0xff] %vm445_vm0, %v443_v50  ;;  %v407_v51 = vpop.f32.mrf.mxu0 }
  0xa1   : > { %v439_v53 = vmul.f32 2.0, %v407_v51 }
  0xa3   : > { %v441_v54 = vsub.f32 %v439_v53, %v415_v52 }
  0xa5   : > { %v444_v49 = vsub.f32 %v441_v54, %v442_v47 }
  0xa7   : > { %447 = vst.msk [vmem:[%s365_s16 + $0x8] sm:$0xff] %vm445_vm0, %v444_v49 }
  0xb1   : > { %v553_v57 = vpop.f32.mrf.mxu2 }
  0xb2   : > { %v567_v58 = vpop.f32.mrf.mxu3 }
  0xb3   : > { %v606_v59 = vpack.c.bf16 %v567_v58, %v553_v57 }
  0xb5   : > { %608 = vst [vmem:[%s376_s22] sm:$0xff] %v606_v59 }
  0xb8   : > { %v587_v60 = vpop.f32.mrf.mxu0 }
  0xb9   : > { %v588_v61 = vadd.f32 %v587_v60, %v574_v56  ;;  %v601_v63 = vpop.f32.mrf.mxu1  ;;  %v555_v1 = vpop.f32.mrf.mxu2 }
  0xba   : > { %v602_v0 = vadd.f32 %v601_v63, %v575_v62  ;;  %v569_v2 = vpop.f32.mrf.mxu3 }
  0xbb   : > { %610 = vst [vmem:[%s387_s13] sm:$0xff] %v588_v61  ;;  %v607_v3 = vpack.c.bf16 %v569_v2, %v555_v1 }
  0xbc   : > { %611 = vst [vmem:[%s387_s13 + $0x8] sm:$0xff] %v602_v0 }
  0xbd   : > { %609 = vst [vmem:[%s376_s22 + $0x8] sm:$0xff] %v607_v3 }
  0xc0   : > { %v589_v4 = vpop.f32.mrf.mxu0 }
  0xc1   : > { %v590_v5 = vadd.f32 %v589_v4, %v574_v56  ;;  %v603_v6 = vpop.f32.mrf.mxu1 }
  0xc2   : > { %v604_v7 = vadd.f32 %v603_v6, %v575_v62 }
  0xc3   : > { %612 = vst [vmem:[%s387_s13 + $0x10] sm:$0xff] %v590_v5 }
  0xc4   : > { %613 = vst [vmem:[%s387_s13 + $0x18] sm:$0xff] %v604_v7 }
  0xc5 PF: > { %s18_s26 = sadd.s32 1, %s894_s26   ;;  %s1199_s24 = smov %s890_s25 }
  0xc6   : > { %p15_p5 = scmp.ge.s32.totalorder %s18_s26, 4   ;;  %s1200_s25 = smov %s1202_s27 }
  0xc8   :  { %17 = sbr.rel (!%p15_p5) target bundleno = 2 (0x2), region = 97 }

// kernel: dgcnn_feature_space.15
= control target key start
LH: loop header
LB: loop body
LE: loop exit
PB: predicated region body
PF: predicated region fallthrough
CT: control target
= control target key end

     0   :  { %7 = vsyncpa [#allocation3], 0  ;;  %s741_s0 = inlined_call_operand.vmem [shape: bf16[2,8,16,256], index: 0, kind: input, shape index: {}]   ;;  %s742_s1 = inlined_call_operand.vmem [shape: f32[2,16,256], index: 1, kind: input, shape index: {}]   ;;  %s743_s2 = inlined_call_operand.hbm [shape: f32[2,16,256], index: 2, kind: output, shape index: {}]  }
   0x1   :  { %9 = vsyncpa [#allocation3 + $0x1], 0  ;;  %s609_s9 = smov 0   ;;  %s611_s10 = smov 0  }
   0x2   :  { %s613_s11 = smov 0   ;;  %s615_s12 = smov 0  }
   0x3   :  { %s617_s13 = smov 0   ;;  %s619_s14 = smov 0  }
   0x4 LB: > { %s437_s15 = sadd.s32 4294967295, %s590_s14   ;;  %s438_s16 = sadd.s32 4294967294, %s590_s14   ;;  %s590_s14 = sphi %s619_s14, %s15_s14   ;;  %s586_s13 = sphi %s617_s13, %s750_s13   ;;  %s582_s12 = sphi %s615_s12, %s749_s12   ;;  %s578_s11 = sphi %s613_s11, %s748_s11   ;;  %s574_s10 = sphi %s611_s10, %s747_s10   ;;  %s570_s9 = sphi %s609_s9, %s746_s9  }
   0x5   : > { %s27_s17 = sadd.s32 1, %s586_s13  ;;  %s92_s18 = sadd.s32 1, %s578_s11 }
   0x6   : > { %p29_p0 = scmp.ge.s32.totalorder %s27_s17, 2  ;;  %p102_p1 = scmp.ne.s32.totalorder %s578_s11, %s574_s10 }
   0x7   : > { %p103_p2 = scmp.eq.s32.totalorder %s437_s15, 1  ;;  %p108_p3 = scmp.ne.s32.totalorder %s574_s10, %s570_s9 }
   0x8   : > { %s752_s17 = smov (%p29_p0, %s27_s17), 0  ;;  %p109_p5 = scmp.eq.s32.totalorder %s438_s16, 1 }
   0x9   : > { %p649_p4 = por %p103_p2, %p102_p1  ;;  %s87_s20 = ssub.s32 %s586_s13, %s752_s17 }
   0xa   : > { %p441_p6 = scmp.ge.s32.totalorder %s590_s14, 1  ;;  %p90_p7 = scmp.eq.s32.totalorder %s87_s20, 0 }
   0xb   : > { %p656_p8 = por %p109_p5, %p108_p3  ;;  %p155_p9 = scmp.lt.s32.totalorder %s590_s14, 3 }
   0xc   : > { %s662_s22 = scalar_select %p90_p7, %s578_s11, %s92_s18  }
   0xd   : > { %p156_p10 = pnand %p441_p6, %p155_p9 }
   0xe   : > { %p193_p11 = scmp.lt.s32.totalorder (!%p156_p10), %s582_s12, 1  ;;  %s189_s4 = sand.u32 (!%p156_p10), 1, %s574_s10  }
   0xf   : > { %159 = sbr.rel (%p156_p10) target bundleno = 57 (0x39), region = 28  ;;  %s442_s5 = sshll.u32 (!%p156_p10), %s189_s4, 5 }
  0x10   : > { %s454_s6 = sshll.u32 (!%p156_p10), %s582_s12, 5  ;;  %s191_s16 = scalar_lea.vmem (!%p156_p10), [#allocation2], %s442_s5 }
  0x11   : > { %s330_s15 = scalar_lea.hbm (!%p156_p10), %s743_s2, %s454_s6  ;;  %s316_s20 = scalar_lea.sflag (!%p156_p10), [#allocation3], %s189_s4 }
  0x12   : > { %s333_s18 = sshll.u32 (!%p156_p10), %s330_s15, 4  ;;  %s334_s18 = int_to_ptr.hbm [resolvable:$true] %s333_s18 }
  0x14   : > { %s666_s23 = scalar_select %p193_p11, %s582_s12, 1 }
  0x15   : > { %s331_s12 = sshll.u32 %s191_s16, 4  ;;  %s332_s12 = int_to_ptr.vmem [resolvable:$true] %s331_s12 }
  0x16   : > { %s452_s24 = sshll.u32 %s666_s23, 7  ;;  %s453_s28 = sshll.u32 %s666_s23, 5 }
  0x17   : > { %s672_s27 = scalar_lea.vmem %s741_s0, %s452_s24  ;;  %s692_s3 = scalar_lea.vmem %s742_s1, %s453_s28 }
  0x18   : > { %v215_v0 = vld [vmem:[%s672_s27] sm:$0xff]  ;;  %v217_v1 = vld [vmem:[%s672_s27 + $0x10] sm:$0xff]  ;;  %v216_v14 = vld [vmem:[%s672_s27 + $0x8] sm:$0xff]  ;;  %s526_s23 = sshra.s32 %s334_s18, 4  ;;  %s527_s23 = int_to_ptr.hbm [resolvable:$true] %s526_s23 }
  0x19   : > { %v219_v2 = vld [vmem:[%s672_s27 + $0x20] sm:$0xff]  ;;  %v221_v3 = vld [vmem:[%s672_s27 + $0x30] sm:$0xff]  ;;  %v231_v5 = vunpack.c.l.bf16 %v215_v0  ;;  %v235_v6 = vunpack.c.l.bf16 %v217_v1  ;;  %v232_v8 = vunpack.c.h.bf16 %v215_v0  ;;  %v236_v9 = vunpack.c.h.bf16 %v217_v1  ;;  %v218_v15 = vld [vmem:[%s672_s27 + $0x18] sm:$0xff]  ;;  %s528_s24 = scalar_lea.hbm %s527_s23, 32  ;;  %p533_p1 = scmp.lt.s32.totalorder %s527_s23, %s743_s2 }
  0x1a   : > { %v223_v4 = vld [vmem:[%s672_s27 + $0x40] sm:$0xff]  ;;  %v239_v7 = vunpack.c.l.bf16 %v219_v2  ;;  %v225_v10 = vld [vmem:[%s672_s27 + $0x50] sm:$0xff]  ;;  %v243_v11 = vunpack.c.l.bf16 %v221_v3  ;;  %v240_v13 = vunpack.c.h.bf16 %v219_v2  ;;  %v220_v18 = vld [vmem:[%s672_s27 + $0x28] sm:$0xff]  ;;  %v244_v20 = vunpack.c.h.bf16 %v221_v3  ;;  %p529_p12 = scmp.ne.s32.totalorder %s527_s23, %s528_s24 }
  0x1b   : > { %v263_v12 = vmax.f32 %v231_v5, %v235_v6  ;;  %v227_v16 = vld [vmem:[%s672_s27 + $0x60] sm:$0xff]  ;;  %v247_v17 = vunpack.c.l.bf16 %v223_v4  ;;  %v270_v21 = vmax.f32 %v232_v8, %v236_v9  ;;  %v222_v22 = vld [vmem:[%s672_s27 + $0x38] sm:$0xff]  ;;  %v233_v23 = vunpack.c.l.bf16 %v216_v14  ;;  %v229_v27 = vld [vmem:[%s672_s27 + $0x70] sm:$0xff] }
  0x1c   : > { %v251_v24 = vunpack.c.l.bf16 %v225_v10  ;;  %v237_v25 = vunpack.c.l.bf16 %v218_v15  ;;  %v241_v26 = vunpack.c.l.bf16 %v220_v18  ;;  %v255_v28 = vunpack.c.l.bf16 %v227_v16  ;;  %v224_v32 = vld [vmem:[%s672_s27 + $0x48] sm:$0xff]  ;;  %v226_v40 = vld [vmem:[%s672_s27 + $0x58] sm:$0xff]  ;;  %v291_v59 = vld [vmem:[%s692_s3] sm:$0xff]  ;;  %p530_p13 = pnand %p529_p12, %p649_p4 }
  0x1d   : > { %v264_v19 = vmax.f32 %v263_v12, %v239_v7  ;;  %v248_v30 = vunpack.c.h.bf16 %v223_v4  ;;  %v271_v31 = vmax.f32 %v270_v21, %v240_v13  ;;  %v245_v33 = vunpack.c.l.bf16 %v222_v22  ;;  %v228_v48 = vld [vmem:[%s672_s27 + $0x68] sm:$0xff]  ;;  %v230_v56 = vld [vmem:[%s672_s27 + $0x78] sm:$0xff]  ;;  %v293_v13 = vld [vmem:[%s692_s3 + $0x10] sm:$0xff]  ;;  %s532_s27 = scalar_lea.hbm %s743_s2, 64 }
  0x1e   : > { %v277_v34 = vmax.f32 %v233_v23, %v237_v25  ;;  %v234_v35 = vunpack.c.h.bf16 %v216_v14  ;;  %v238_v36 = vunpack.c.h.bf16 %v218_v15  ;;  %v252_v38 = vunpack.c.h.bf16 %v225_v10  ;;  %v292_v2 = vld [vmem:[%s692_s3 + $0x8] sm:$0xff]  ;;  %p531_p0 = pneg %p530_p13  ;;  %p534_p2 = scmp.lt.s32.totalorder %s532_s27, %s528_s24 }
  0x1f   : > { %v265_v29 = vmax.f32 %v264_v19, %v243_v11  ;;  %v272_v39 = vmax.f32 %v271_v31, %v244_v20  ;;  %v242_v41 = vunpack.c.h.bf16 %v220_v18  ;;  %v259_v42 = vunpack.c.l.bf16 %v229_v27  ;;  %v294_v20 = vld [vmem:[%s692_s3 + $0x18] sm:$0xff] }
  0x20   : > { %v256_v43 = vunpack.c.h.bf16 %v227_v16  ;;  %v249_v44 = vunpack.c.l.bf16 %v224_v32  ;;  %v278_v45 = vmax.f32 %v277_v34, %v241_v26  ;;  %v246_v49 = vunpack.c.h.bf16 %v222_v22  ;;  %p535_p3 = por %p534_p2, %p533_p1 }
  0x21   : > { %v266_v37 = vmax.f32 %v265_v29, %v247_v17  ;;  %v273_v47 = vmax.f32 %v272_v39, %v248_v30  ;;  %v284_v50 = vmax.f32 %v234_v35, %v238_v36  ;;  %v260_v51 = vunpack.c.h.bf16 %v229_v27 }
  0x22   : > { %v253_v52 = vunpack.c.l.bf16 %v226_v40  ;;  %v279_v53 = vmax.f32 %v278_v45, %v245_v33  ;;  %v250_v57 = vunpack.c.h.bf16 %v224_v32  ;;  %v257_v60 = vunpack.c.l.bf16 %v228_v48  ;;  %p536_p5 = pnand %p535_p3, %p531_p0 }
  0x23   : > { %v267_v46 = vmax.f32 %v266_v37, %v251_v24  ;;  %v274_v55 = vmax.f32 %v273_v47, %v252_v38  ;;  %v285_v58 = vmax.f32 %v284_v50, %v242_v41  ;;  %v254_v0 = vunpack.c.h.bf16 %v226_v40 }
  0x24   : > { %v280_v61 = vmax.f32 %v279_v53, %v249_v44  ;;  %v261_v3 = vunpack.c.l.bf16 %v230_v56  ;;  %v258_v7 = vunpack.c.h.bf16 %v228_v48  ;;  %v262_v10 = vunpack.c.h.bf16 %v230_v56 }
  0x25   : > { %v268_v54 = vmax.f32 %v267_v46, %v255_v28  ;;  %v275_v63 = vmax.f32 %v274_v55, %v256_v43  ;;  %v286_v1 = vmax.f32 %v285_v58, %v246_v49 }
  0x26   : > { %v281_v4 = vmax.f32 %v280_v61, %v253_v52 }
  0x27   : > { %v269_v62 = vmax.f32 %v268_v54, %v259_v42  ;;  %v276_v6 = vmax.f32 %v275_v63, %v260_v51  ;;  %v287_v8 = vmax.f32 %v286_v1, %v250_v57 }
  0x28   : > { %v282_v9 = vmax.f32 %v281_v4, %v257_v60 }
  0x29   : > { %v295_v5 = vadd.f32 %v291_v59, %v269_v62  ;;  %v296_v12 = vadd.f32 %v292_v2, %v276_v6  ;;  %v288_v14 = vmax.f32 %v287_v8, %v254_v0 }
  0x2a   : > { %v283_v15 = vmax.f32 %v282_v9, %v261_v3 }
  0x2b   : > { %vm299_vm0 = vcmp.gt.f32.partialorder %v295_v5, 0.0  ;;  %v303_v11 = vmul.f32 0.2, %v295_v5  ;;  %vm300_vm1 = vcmp.gt.f32.partialorder %v296_v12, 0.0  ;;  %v304_v17 = vmul.f32 0.2, %v296_v12 }
  0x2c   : > { %v289_v18 = vmax.f32 %v288_v14, %v258_v7  ;;  %v297_v19 = vadd.f32 %v293_v13, %v283_v15 }
  0x2d   : > { %v307_v16 = vsel %vm299_vm0, %v295_v5, %v303_v11  ;;  %v308_v21 = vsel %vm300_vm1, %v296_v12, %v304_v17 }
  0x2e   : > { %311 = vst [vmem:[%s191_s16] sm:$0xff] %v307_v16  ;;  %v290_v22 = vmax.f32 %v289_v18, %v262_v10  ;;  %vm301_vm2 = vcmp.gt.f32.partialorder %v297_v19, 0.0  ;;  %v305_v23 = vmul.f32 0.2, %v297_v19 }
  0x2f   : > { %312 = vst [vmem:[%s191_s16 + $0x8] sm:$0xff] %v308_v21 }
  0x30   : > { %v298_v24 = vadd.f32 %v294_v20, %v290_v22  ;;  %v309_v25 = vsel %vm301_vm2, %v297_v19, %v305_v23 }
  0x31   : > { %313 = vst [vmem:[%s191_s16 + $0x10] sm:$0xff] %v309_v25 }
  0x32   : > { %vm302_vm3 = vcmp.gt.f32.partialorder %v298_v24, 0.0  ;;  %v306_v26 = vmul.f32 0.2, %v298_v24 }
  0x34   : > { %v310_v27 = vsel %vm302_vm3, %v298_v24, %v306_v26 }
  0x35   : > { %314 = vst [vmem:[%s191_s16 + $0x18] sm:$0xff] %v310_v27 }
  0x36   : > { %539 = shalt.err (!%p536_p5)
}
  0x37   : > { %s592_s30 = smov 256   ;;  %s593_s3 = smov 16  }
  0x38   : > { %455 = dma.vmem_to_hbm [thread:$0]  (%p649_p4), %s332_s12, 512, %s334_s18, %s316_s20, %s592_s30, %s592_s30, %s593_s3  }
  0x39 PF: > { %p461_p6 = scmp.ge.s32.totalorder %s590_s14, 2  ;;  %s348_s4 = sand.u32 1, %s570_s9  }
  0x3a   : > { %s349_s5 = scalar_lea.sflag [#allocation3], %s348_s4 }
  0x3b   : > { %p458_p7 = pnand %p461_p6, %p656_p8 }
  0x3d   : > { %p459_p9 = pneg %p458_p7 }
  0x3f   : > { %565 = dma.done.wait (%p459_p9), %s349_s5, 512  }
  0x40   : > { %567 = vsyncadd (%p459_p9), %s349_s5, 4294966784  ;;  %s15_s14 = sadd.s32 1, %s590_s14   ;;  %s746_s9 = smov %s574_s10 }
  0x41   : > { %p12_p10 = scmp.ge.s32.totalorder %s15_s14, 4   ;;  %s747_s10 = smov %s578_s11 }
  0x42   : > { %s748_s11 = smov %s662_s22  ;;  %s749_s12 = smov %s586_s13 }
  0x43   : > { %s750_s13 = smov %s752_s17  ;;  %14 = sbr.rel (!%p12_p10) target bundleno = 4 (0x4), region = 66 }
  0x48   :  { %355 = vsyncpa [#allocation3], 1 }
  0x49   :  { %357 = vsyncpa [#allocation3 + $0x1], 1 }

</bundles_post_ra>
